<compile_context>
chip_gen: v5e
topology: v5e:2x2
jax: 0.10.0
libtpu: 0.0.40
codegen_flags: <defaults>
</compile_context>

<pallas_src>
import functools

import jax
import jax.numpy as jnp
from jax import lax
from jax.experimental import pallas as pl
from jax.experimental.pallas import tpu as pltpu


def _fused_weather_lstm_kernel(num_layers, T, B, x_ref, *refs):
    """Fused multi-layer LSTM + final Linear.

    x_ref:  (T*B, D_in)  time-major-flattened input
    refs:   [w_ih_0 (D,4H), w_hh_0 (H,4H), b_0 (1,4H), ... per layer ...,
             w_fc (H,O), b_fc (1,O),            # inputs
             out (B,O),                          # output
             seq_sc (T*B, H) f32]                # VMEM scratch: inter-layer hidden sequence
    """
    seq_sc = refs[-1]
    out_ref = refs[-2]
    bfc_ref = refs[-3]
    wfc_ref = refs[-4]
    w_refs = refs[: 3 * num_layers]

    H = w_refs[1].shape[0]  # w_hh_0: (H, 4H)

    # Lane mask selecting the "g" gate lanes of the (B, 4H) gate vreg. Hoisted (computed once).
    lane = lax.broadcasted_iota(jnp.int32, (B, 4 * H), 1)
    g_mask = (lane >= 2 * H) & (lane < 3 * H)

    def run_layer(gx, whh, write_seq):
        """Recurrence for one layer. gx = X @ W_ih + b precomputed for all timesteps."""
        h = jnp.zeros((B, H), jnp.float32)
        c = jnp.zeros((B, H), jnp.float32)
        for t in range(T):  # fully unrolled: T is small and static
            gates = gx[t * B:(t + 1) * B, :] + jnp.dot(
                h, whh, preferred_element_type=jnp.float32
            )  # (B, 4H)
            # One full-vreg tanh gives tanh on g lanes and sigmoid on i/f/o lanes:
            #   sigmoid(z) = 0.5 * tanh(z/2) + 0.5
            pre = jnp.where(g_mask, gates, 0.5 * gates)
            th = jnp.tanh(pre)
            act = jnp.where(g_mask, th, 0.5 * th + 0.5)
            i_g = act[:, 0:H]
            f_g = act[:, H:2 * H]
            g_g = act[:, 2 * H:3 * H]
            o_g = act[:, 3 * H:4 * H]
            c = f_g * c + i_g * g_g
            h = o_g * jnp.tanh(c)
            if write_seq:
                seq_sc[pl.ds(t * B, B), :] = h
        return h

    layer_in = x_ref[...].astype(jnp.float32)  # (T*B, D_in)
    h_last = None
    for l in range(num_layers):
        w_ih = w_refs[3 * l][...]
        w_hh = w_refs[3 * l + 1][...]
        b = w_refs[3 * l + 2][...]
        # Hoisted input projection: one big matmul for all timesteps of this layer.
        gx = jnp.dot(layer_in, w_ih, preferred_element_type=jnp.float32) + b  # (T*B, 4H)
        last_layer = l == num_layers - 1
        h_last = run_layer(gx, w_hh, write_seq=not last_layer)
        if not last_layer:
            layer_in = seq_sc[...]  # layer l output feeds layer l+1 (stays in VMEM)

    # Final FC folded into the same kernel: (B, H) @ (H, O) + (1, O).
    out_ref[...] = (
        jnp.dot(h_last, wfc_ref[...], preferred_element_type=jnp.float32) + bfc_ref[...]
    ).astype(out_ref.dtype)


def init_weather_lstm_params(key, input_size, hidden_size, num_layers, output_size):
    """Deterministic init matching PyTorch shapes: uniform(-1/sqrt(H), 1/sqrt(H))."""
    params = {"lstm": [], "fc": None}
    k = 1.0 / jnp.sqrt(jnp.float32(hidden_size))
    for layer in range(num_layers):
        d_in = input_size if layer == 0 else hidden_size
        key, k1, k2, k3, k4 = jax.random.split(key, 5)
        w_ih = jax.random.uniform(k1, (4 * hidden_size, d_in), jnp.float32, -k, k)
        w_hh = jax.random.uniform(k2, (4 * hidden_size, hidden_size), jnp.float32, -k, k)
        b_ih = jax.random.uniform(k3, (4 * hidden_size,), jnp.float32, -k, k)
        b_hh = jax.random.uniform(k4, (4 * hidden_size,), jnp.float32, -k, k)
        params["lstm"].append({
            "w_ih_t": w_ih.T,                                 # (d_in, 4H)
            "w_hh_t": w_hh.T,                                 # (H, 4H)
            "b": (b_ih + b_hh).reshape(1, 4 * hidden_size),   # (1, 4H)
        })
    key, k5, k6 = jax.random.split(key, 3)
    w_fc = jax.random.uniform(k5, (output_size, hidden_size), jnp.float32, -k, k)
    b_fc = jax.random.uniform(k6, (output_size,), jnp.float32, -k, k)
    params["fc"] = {"w_t": w_fc.T, "b": b_fc.reshape(1, output_size)}
    return params


@jax.jit
def weather_lstm_forward(params, x):
    """x: (B, T, input_size) batch-first, like the PyTorch module. Returns (B, output_size)."""
    B, T, D = x.shape
    num_layers = len(params["lstm"])
    H = params["lstm"][0]["w_hh_t"].shape[0]
    O = params["fc"]["w_t"].shape[1]

    # Wrapper glue (plain XLA): batch-first -> time-major, flattened to (T*B, D) so the kernel
    # needs no relayout and the per-layer input projection is a single 2D matmul.
    x_flat = jnp.transpose(x, (1, 0, 2)).reshape(T * B, D).astype(jnp.float32)

    flat_w = []
    for lw in params["lstm"]:
        flat_w += [lw["w_ih_t"], lw["w_hh_t"], lw["b"]]

    kernel = functools.partial(_fused_weather_lstm_kernel, num_layers, T, B)
    return pl.pallas_call(
        kernel,
        out_shape=jax.ShapeDtypeStruct((B, O), jnp.float32),
        scratch_shapes=[pltpu.VMEM((T * B, H), jnp.float32)],
    )(x_flat, *flat_w, params["fc"]["w_t"], params["fc"]["b"])


if __name__ == "__main__":
    batch, seq, input_size = 2, 8, 4
    hidden_size, num_layers, output_size = 32, 2, 4

    key = jax.random.PRNGKey(0)
    key, pkey, xkey = jax.random.split(key, 3)
    params = init_weather_lstm_params(pkey, input_size, hidden_size, num_layers, output_size)
    x = jax.random.normal(xkey, (batch, seq, input_size), jnp.float32)

    out = weather_lstm_forward(params, x)
    jax.block_until_ready(out)
    assert out.shape == (batch, output_size)
    assert bool(jnp.all(jnp.isfinite(out)))
    print("KERNEL_OK")
</pallas_src>

<mosaic_0001>
module attributes {stable_mosaic.version = 11 : i64} {
  func.func @_fused_weather_lstm_kernel(%arg0: memref<16x4xf32, #tpu.memory_space<vmem>>, %arg1: memref<4x128xf32, #tpu.memory_space<vmem>>, %arg2: memref<32x128xf32, #tpu.memory_space<vmem>>, %arg3: memref<1x128xf32, #tpu.memory_space<vmem>>, %arg4: memref<32x128xf32, #tpu.memory_space<vmem>>, %arg5: memref<32x128xf32, #tpu.memory_space<vmem>>, %arg6: memref<1x128xf32, #tpu.memory_space<vmem>>, %arg7: memref<32x4xf32, #tpu.memory_space<vmem>>, %arg8: memref<1x4xf32, #tpu.memory_space<vmem>>, %arg9: memref<2x4xf32, #tpu.memory_space<vmem>>, %arg10: memref<16x32xf32, #tpu.memory_space<vmem>>) attributes {dimension_semantics = [], scalar_prefetch = 0 : i64, scratch_operands = 1 : i64, tpu.core_type = #tpu.core_type<tc>} {
    %0 = tpu.iota {dimensions = array<i32: 1>} : vector<2x128xi32>
    %c64_i32 = arith.constant 64 : i32
    %1 = vector.broadcast %c64_i32 : i32 to vector<2x128xi32>
    %2 = arith.cmpi sge, %0, %1 : vector<2x128xi32>
    %c96_i32 = arith.constant 96 : i32
    %3 = vector.broadcast %c96_i32 : i32 to vector<2x128xi32>
    %4 = arith.cmpi slt, %0, %3 : vector<2x128xi32>
    %5 = arith.andi %2, %4 : vector<2x128xi1>
    %c0 = arith.constant 0 : index
    %c0_0 = arith.constant 0 : index
    %6 = vector.load %arg0[%c0, %c0_0] : memref<16x4xf32, #tpu.memory_space<vmem>>, vector<16x4xf32>
    %c0_1 = arith.constant 0 : index
    %c0_2 = arith.constant 0 : index
    %7 = vector.load %arg1[%c0_1, %c0_2] : memref<4x128xf32, #tpu.memory_space<vmem>>, vector<4x128xf32>
    %c0_3 = arith.constant 0 : index
    %c0_4 = arith.constant 0 : index
    %8 = vector.load %arg2[%c0_3, %c0_4] : memref<32x128xf32, #tpu.memory_space<vmem>>, vector<32x128xf32>
    %c0_5 = arith.constant 0 : index
    %c0_6 = arith.constant 0 : index
    %9 = vector.load %arg3[%c0_5, %c0_6] : memref<1x128xf32, #tpu.memory_space<vmem>>, vector<1x128xf32>
    %cst = arith.constant dense<0.000000e+00> : vector<16x128xf32>
    %10 = tpu.matmul %6, %7, %cst {dimension_numbers = #tpu.dot_dimension_numbers<[1], [0], [0], [1], [0, 0, 1, 1], [], []>} : vector<16x4xf32>, vector<4x128xf32>, vector<16x128xf32> -> vector<16x128xf32>
    %11 = vector.broadcast %9 : vector<1x128xf32> to vector<16x128xf32>
    %12 = arith.addf %10, %11 : vector<16x128xf32>
    %cst_7 = arith.constant 0.000000e+00 : f32
    %13 = vector.broadcast %cst_7 : f32 to vector<2x32xf32>
    %cst_8 = arith.constant 0.000000e+00 : f32
    %14 = vector.broadcast %cst_8 : f32 to vector<2x32xf32>
    %15 = vector.extract_strided_slice %12 {offsets = [0, 0], sizes = [2, 128], strides = [1, 1]} : vector<16x128xf32> to vector<2x128xf32>
    %cst_9 = arith.constant dense<0.000000e+00> : vector<2x128xf32>
    %16 = tpu.matmul %13, %8, %cst_9 {dimension_numbers = #tpu.dot_dimension_numbers<[1], [0], [0], [1], [0, 0, 1, 1], [], []>} : vector<2x32xf32>, vector<32x128xf32>, vector<2x128xf32> -> vector<2x128xf32>
    %17 = arith.addf %15, %16 : vector<2x128xf32>
    %cst_10 = arith.constant 5.000000e-01 : f32
    %18 = vector.broadcast %cst_10 : f32 to vector<2x128xf32>
    %19 = arith.mulf %18, %17 : vector<2x128xf32>
    %20 = arith.select %5, %17, %19 : vector<2x128xi1>, vector<2x128xf32>
    %21 = math.tanh %20 : vector<2x128xf32>
    %cst_11 = arith.constant 5.000000e-01 : f32
    %22 = vector.broadcast %cst_11 : f32 to vector<2x128xf32>
    %23 = arith.mulf %22, %21 : vector<2x128xf32>
    %cst_12 = arith.constant 5.000000e-01 : f32
    %24 = vector.broadcast %cst_12 : f32 to vector<2x128xf32>
    %25 = arith.addf %23, %24 : vector<2x128xf32>
    %26 = arith.select %5, %21, %25 : vector<2x128xi1>, vector<2x128xf32>
    %27 = vector.extract_strided_slice %26 {offsets = [0, 0], sizes = [2, 32], strides = [1, 1]} : vector<2x128xf32> to vector<2x32xf32>
    %28 = vector.extract_strided_slice %26 {offsets = [0, 32], sizes = [2, 32], strides = [1, 1]} : vector<2x128xf32> to vector<2x32xf32>
    %29 = vector.extract_strided_slice %26 {offsets = [0, 64], sizes = [2, 32], strides = [1, 1]} : vector<2x128xf32> to vector<2x32xf32>
    %30 = vector.extract_strided_slice %26 {offsets = [0, 96], sizes = [2, 32], strides = [1, 1]} : vector<2x128xf32> to vector<2x32xf32>
    %31 = arith.mulf %28, %14 : vector<2x32xf32>
    %32 = arith.mulf %27, %29 : vector<2x32xf32>
    %33 = arith.addf %31, %32 : vector<2x32xf32>
    %34 = math.tanh %33 : vector<2x32xf32>
    %35 = arith.mulf %30, %34 : vector<2x32xf32>
    %c0_13 = arith.constant 0 : index
    %c0_14 = arith.constant 0 : index
    %36 = vector.load %arg10[%c0_13, %c0_14] : memref<16x32xf32, #tpu.memory_space<vmem>>, vector<2x32xf32>
    tpu.vector_store %arg10[%c0_13, %c0_14], %35 {strides = array<i32>} : memref<16x32xf32, #tpu.memory_space<vmem>>, vector<2x32xf32>,
    %37 = vector.extract_strided_slice %12 {offsets = [2, 0], sizes = [2, 128], strides = [1, 1]} : vector<16x128xf32> to vector<2x128xf32>
    %cst_15 = arith.constant dense<0.000000e+00> : vector<2x128xf32>
    %38 = tpu.matmul %35, %8, %cst_15 {dimension_numbers = #tpu.dot_dimension_numbers<[1], [0], [0], [1], [0, 0, 1, 1], [], []>} : vector<2x32xf32>, vector<32x128xf32>, vector<2x128xf32> -> vector<2x128xf32>
    %39 = arith.addf %37, %38 : vector<2x128xf32>
    %cst_16 = arith.constant 5.000000e-01 : f32
    %40 = vector.broadcast %cst_16 : f32 to vector<2x128xf32>
    %41 = arith.mulf %40, %39 : vector<2x128xf32>
    %42 = arith.select %5, %39, %41 : vector<2x128xi1>, vector<2x128xf32>
    %43 = math.tanh %42 : vector<2x128xf32>
    %cst_17 = arith.constant 5.000000e-01 : f32
    %44 = vector.broadcast %cst_17 : f32 to vector<2x128xf32>
    %45 = arith.mulf %44, %43 : vector<2x128xf32>
    %cst_18 = arith.constant 5.000000e-01 : f32
    %46 = vector.broadcast %cst_18 : f32 to vector<2x128xf32>
    %47 = arith.addf %45, %46 : vector<2x128xf32>
    %48 = arith.select %5, %43, %47 : vector<2x128xi1>, vector<2x128xf32>
    %49 = vector.extract_strided_slice %48 {offsets = [0, 0], sizes = [2, 32], strides = [1, 1]} : vector<2x128xf32> to vector<2x32xf32>
    %50 = vector.extract_strided_slice %48 {offsets = [0, 32], sizes = [2, 32], strides = [1, 1]} : vector<2x128xf32> to vector<2x32xf32>
    %51 = vector.extract_strided_slice %48 {offsets = [0, 64], sizes = [2, 32], strides = [1, 1]} : vector<2x128xf32> to vector<2x32xf32>
    %52 = vector.extract_strided_slice %48 {offsets = [0, 96], sizes = [2, 32], strides = [1, 1]} : vector<2x128xf32> to vector<2x32xf32>
    %53 = arith.mulf %50, %33 : vector<2x32xf32>
    %54 = arith.mulf %49, %51 : vector<2x32xf32>
    %55 = arith.addf %53, %54 : vector<2x32xf32>
    %56 = math.tanh %55 : vector<2x32xf32>
    %57 = arith.mulf %52, %56 : vector<2x32xf32>
    %c2 = arith.constant 2 : index
    %c0_19 = arith.constant 0 : index
    %58 = vector.load %arg10[%c2, %c0_19] : memref<16x32xf32, #tpu.memory_space<vmem>>, vector<2x32xf32>
    tpu.vector_store %arg10[%c2, %c0_19], %57 {strides = array<i32>} : memref<16x32xf32, #tpu.memory_space<vmem>>, vector<2x32xf32>,
    %59 = vector.extract_strided_slice %12 {offsets = [4, 0], sizes = [2, 128], strides = [1, 1]} : vector<16x128xf32> to vector<2x128xf32>
    %cst_20 = arith.constant dense<0.000000e+00> : vector<2x128xf32>
    %60 = tpu.matmul %57, %8, %cst_20 {dimension_numbers = #tpu.dot_dimension_numbers<[1], [0], [0], [1], [0, 0, 1, 1], [], []>} : vector<2x32xf32>, vector<32x128xf32>, vector<2x128xf32> -> vector<2x128xf32>
    %61 = arith.addf %59, %60 : vector<2x128xf32>
    %cst_21 = arith.constant 5.000000e-01 : f32
    %62 = vector.broadcast %cst_21 : f32 to vector<2x128xf32>
    %63 = arith.mulf %62, %61 : vector<2x128xf32>
    %64 = arith.select %5, %61, %63 : vector<2x128xi1>, vector<2x128xf32>
    %65 = math.tanh %64 : vector<2x128xf32>
    %cst_22 = arith.constant 5.000000e-01 : f32
    %66 = vector.broadcast %cst_22 : f32 to vector<2x128xf32>
    %67 = arith.mulf %66, %65 : vector<2x128xf32>
    %cst_23 = arith.constant 5.000000e-01 : f32
    %68 = vector.broadcast %cst_23 : f32 to vector<2x128xf32>
    %69 = arith.addf %67, %68 : vector<2x128xf32>
    %70 = arith.select %5, %65, %69 : vector<2x128xi1>, vector<2x128xf32>
    %71 = vector.extract_strided_slice %70 {offsets = [0, 0], sizes = [2, 32], strides = [1, 1]} : vector<2x128xf32> to vector<2x32xf32>
    %72 = vector.extract_strided_slice %70 {offsets = [0, 32], sizes = [2, 32], strides = [1, 1]} : vector<2x128xf32> to vector<2x32xf32>
    %73 = vector.extract_strided_slice %70 {offsets = [0, 64], sizes = [2, 32], strides = [1, 1]} : vector<2x128xf32> to vector<2x32xf32>
    %74 = vector.extract_strided_slice %70 {offsets = [0, 96], sizes = [2, 32], strides = [1, 1]} : vector<2x128xf32> to vector<2x32xf32>
    %75 = arith.mulf %72, %55 : vector<2x32xf32>
    %76 = arith.mulf %71, %73 : vector<2x32xf32>
    %77 = arith.addf %75, %76 : vector<2x32xf32>
    %78 = math.tanh %77 : vector<2x32xf32>
    %79 = arith.mulf %74, %78 : vector<2x32xf32>
    %c4 = arith.constant 4 : index
    %c0_24 = arith.constant 0 : index
    %80 = vector.load %arg10[%c4, %c0_24] : memref<16x32xf32, #tpu.memory_space<vmem>>, vector<2x32xf32>
    tpu.vector_store %arg10[%c4, %c0_24], %79 {strides = array<i32>} : memref<16x32xf32, #tpu.memory_space<vmem>>, vector<2x32xf32>,
    %81 = vector.extract_strided_slice %12 {offsets = [6, 0], sizes = [2, 128], strides = [1, 1]} : vector<16x128xf32> to vector<2x128xf32>
    %cst_25 = arith.constant dense<0.000000e+00> : vector<2x128xf32>
    %82 = tpu.matmul %79, %8, %cst_25 {dimension_numbers = #tpu.dot_dimension_numbers<[1], [0], [0], [1], [0, 0, 1, 1], [], []>} : vector<2x32xf32>, vector<32x128xf32>, vector<2x128xf32> -> vector<2x128xf32>
    %83 = arith.addf %81, %82 : vector<2x128xf32>
    %cst_26 = arith.constant 5.000000e-01 : f32
    %84 = vector.broadcast %cst_26 : f32 to vector<2x128xf32>
    %85 = arith.mulf %84, %83 : vector<2x128xf32>
    %86 = arith.select %5, %83, %85 : vector<2x128xi1>, vector<2x128xf32>
    %87 = math.tanh %86 : vector<2x128xf32>
    %cst_27 = arith.constant 5.000000e-01 : f32
    %88 = vector.broadcast %cst_27 : f32 to vector<2x128xf32>
    %89 = arith.mulf %88, %87 : vector<2x128xf32>
    %cst_28 = arith.constant 5.000000e-01 : f32
    %90 = vector.broadcast %cst_28 : f32 to vector<2x128xf32>
    %91 = arith.addf %89, %90 : vector<2x128xf32>
    %92 = arith.select %5, %87, %91 : vector<2x128xi1>, vector<2x128xf32>
    %93 = vector.extract_strided_slice %92 {offsets = [0, 0], sizes = [2, 32], strides = [1, 1]} : vector<2x128xf32> to vector<2x32xf32>
    %94 = vector.extract_strided_slice %92 {offsets = [0, 32], sizes = [2, 32], strides = [1, 1]} : vector<2x128xf32> to vector<2x32xf32>
    %95 = vector.extract_strided_slice %92 {offsets = [0, 64], sizes = [2, 32], strides = [1, 1]} : vector<2x128xf32> to vector<2x32xf32>
    %96 = vector.extract_strided_slice %92 {offsets = [0, 96], sizes = [2, 32], strides = [1, 1]} : vector<2x128xf32> to vector<2x32xf32>
    %97 = arith.mulf %94, %77 : vector<2x32xf32>
    %98 = arith.mulf %93, %95 : vector<2x32xf32>
    %99 = arith.addf %97, %98 : vector<2x32xf32>
    %100 = math.tanh %99 : vector<2x32xf32>
    %101 = arith.mulf %96, %100 : vector<2x32xf32>
    %c6 = arith.constant 6 : index
    %c0_29 = arith.constant 0 : index
    %102 = vector.load %arg10[%c6, %c0_29] : memref<16x32xf32, #tpu.memory_space<vmem>>, vector<2x32xf32>
    tpu.vector_store %arg10[%c6, %c0_29], %101 {strides = array<i32>} : memref<16x32xf32, #tpu.memory_space<vmem>>, vector<2x32xf32>,
    %103 = vector.extract_strided_slice %12 {offsets = [8, 0], sizes = [2, 128], strides = [1, 1]} : vector<16x128xf32> to vector<2x128xf32>
    %cst_30 = arith.constant dense<0.000000e+00> : vector<2x128xf32>
    %104 = tpu.matmul %101, %8, %cst_30 {dimension_numbers = #tpu.dot_dimension_numbers<[1], [0], [0], [1], [0, 0, 1, 1], [], []>} : vector<2x32xf32>, vector<32x128xf32>, vector<2x128xf32> -> vector<2x128xf32>
    %105 = arith.addf %103, %104 : vector<2x128xf32>
    %cst_31 = arith.constant 5.000000e-01 : f32
    %106 = vector.broadcast %cst_31 : f32 to vector<2x128xf32>
    %107 = arith.mulf %106, %105 : vector<2x128xf32>
    %108 = arith.select %5, %105, %107 : vector<2x128xi1>, vector<2x128xf32>
    %109 = math.tanh %108 : vector<2x128xf32>
    %cst_32 = arith.constant 5.000000e-01 : f32
    %110 = vector.broadcast %cst_32 : f32 to vector<2x128xf32>
    %111 = arith.mulf %110, %109 : vector<2x128xf32>
    %cst_33 = arith.constant 5.000000e-01 : f32
    %112 = vector.broadcast %cst_33 : f32 to vector<2x128xf32>
    %113 = arith.addf %111, %112 : vector<2x128xf32>
    %114 = arith.select %5, %109, %113 : vector<2x128xi1>, vector<2x128xf32>
    %115 = vector.extract_strided_slice %114 {offsets = [0, 0], sizes = [2, 32], strides = [1, 1]} : vector<2x128xf32> to vector<2x32xf32>
    %116 = vector.extract_strided_slice %114 {offsets = [0, 32], sizes = [2, 32], strides = [1, 1]} : vector<2x128xf32> to vector<2x32xf32>
    %117 = vector.extract_strided_slice %114 {offsets = [0, 64], sizes = [2, 32], strides = [1, 1]} : vector<2x128xf32> to vector<2x32xf32>
    %118 = vector.extract_strided_slice %114 {offsets = [0, 96], sizes = [2, 32], strides = [1, 1]} : vector<2x128xf32> to vector<2x32xf32>
    %119 = arith.mulf %116, %99 : vector<2x32xf32>
    %120 = arith.mulf %115, %117 : vector<2x32xf32>
    %121 = arith.addf %119, %120 : vector<2x32xf32>
    %122 = math.tanh %121 : vector<2x32xf32>
    %123 = arith.mulf %118, %122 : vector<2x32xf32>
    %c8 = arith.constant 8 : index
    %c0_34 = arith.constant 0 : index
    %124 = vector.load %arg10[%c8, %c0_34] : memref<16x32xf32, #tpu.memory_space<vmem>>, vector<2x32xf32>
    tpu.vector_store %arg10[%c8, %c0_34], %123 {strides = array<i32>} : memref<16x32xf32, #tpu.memory_space<vmem>>, vector<2x32xf32>,
    %125 = vector.extract_strided_slice %12 {offsets = [10, 0], sizes = [2, 128], strides = [1, 1]} : vector<16x128xf32> to vector<2x128xf32>
    %cst_35 = arith.constant dense<0.000000e+00> : vector<2x128xf32>
    %126 = tpu.matmul %123, %8, %cst_35 {dimension_numbers = #tpu.dot_dimension_numbers<[1], [0], [0], [1], [0, 0, 1, 1], [], []>} : vector<2x32xf32>, vector<32x128xf32>, vector<2x128xf32> -> vector<2x128xf32>
    %127 = arith.addf %125, %126 : vector<2x128xf32>
    %cst_36 = arith.constant 5.000000e-01 : f32
    %128 = vector.broadcast %cst_36 : f32 to vector<2x128xf32>
    %129 = arith.mulf %128, %127 : vector<2x128xf32>
    %130 = arith.select %5, %127, %129 : vector<2x128xi1>, vector<2x128xf32>
    %131 = math.tanh %130 : vector<2x128xf32>
    %cst_37 = arith.constant 5.000000e-01 : f32
    %132 = vector.broadcast %cst_37 : f32 to vector<2x128xf32>
    %133 = arith.mulf %132, %131 : vector<2x128xf32>
    %cst_38 = arith.constant 5.000000e-01 : f32
    %134 = vector.broadcast %cst_38 : f32 to vector<2x128xf32>
    %135 = arith.addf %133, %134 : vector<2x128xf32>
    %136 = arith.select %5, %131, %135 : vector<2x128xi1>, vector<2x128xf32>
    %137 = vector.extract_strided_slice %136 {offsets = [0, 0], sizes = [2, 32], strides = [1, 1]} : vector<2x128xf32> to vector<2x32xf32>
    %138 = vector.extract_strided_slice %136 {offsets = [0, 32], sizes = [2, 32], strides = [1, 1]} : vector<2x128xf32> to vector<2x32xf32>
    %139 = vector.extract_strided_slice %136 {offsets = [0, 64], sizes = [2, 32], strides = [1, 1]} : vector<2x128xf32> to vector<2x32xf32>
    %140 = vector.extract_strided_slice %136 {offsets = [0, 96], sizes = [2, 32], strides = [1, 1]} : vector<2x128xf32> to vector<2x32xf32>
    %141 = arith.mulf %138, %121 : vector<2x32xf32>
    %142 = arith.mulf %137, %139 : vector<2x32xf32>
    %143 = arith.addf %141, %142 : vector<2x32xf32>
    %144 = math.tanh %143 : vector<2x32xf32>
    %145 = arith.mulf %140, %144 : vector<2x32xf32>
    %c10 = arith.constant 10 : index
    %c0_39 = arith.constant 0 : index
    %146 = vector.load %arg10[%c10, %c0_39] : memref<16x32xf32, #tpu.memory_space<vmem>>, vector<2x32xf32>
    tpu.vector_store %arg10[%c10, %c0_39], %145 {strides = array<i32>} : memref<16x32xf32, #tpu.memory_space<vmem>>, vector<2x32xf32>,
    %147 = vector.extract_strided_slice %12 {offsets = [12, 0], sizes = [2, 128], strides = [1, 1]} : vector<16x128xf32> to vector<2x128xf32>
    %cst_40 = arith.constant dense<0.000000e+00> : vector<2x128xf32>
    %148 = tpu.matmul %145, %8, %cst_40 {dimension_numbers = #tpu.dot_dimension_numbers<[1], [0], [0], [1], [0, 0, 1, 1], [], []>} : vector<2x32xf32>, vector<32x128xf32>, vector<2x128xf32> -> vector<2x128xf32>
    %149 = arith.addf %147, %148 : vector<2x128xf32>
    %cst_41 = arith.constant 5.000000e-01 : f32
    %150 = vector.broadcast %cst_41 : f32 to vector<2x128xf32>
    %151 = arith.mulf %150, %149 : vector<2x128xf32>
    %152 = arith.select %5, %149, %151 : vector<2x128xi1>, vector<2x128xf32>
    %153 = math.tanh %152 : vector<2x128xf32>
    %cst_42 = arith.constant 5.000000e-01 : f32
    %154 = vector.broadcast %cst_42 : f32 to vector<2x128xf32>
    %155 = arith.mulf %154, %153 : vector<2x128xf32>
    %cst_43 = arith.constant 5.000000e-01 : f32
    %156 = vector.broadcast %cst_43 : f32 to vector<2x128xf32>
    %157 = arith.addf %155, %156 : vector<2x128xf32>
    %158 = arith.select %5, %153, %157 : vector<2x128xi1>, vector<2x128xf32>
    %159 = vector.extract_strided_slice %158 {offsets = [0, 0], sizes = [2, 32], strides = [1, 1]} : vector<2x128xf32> to vector<2x32xf32>
    %160 = vector.extract_strided_slice %158 {offsets = [0, 32], sizes = [2, 32], strides = [1, 1]} : vector<2x128xf32> to vector<2x32xf32>
    %161 = vector.extract_strided_slice %158 {offsets = [0, 64], sizes = [2, 32], strides = [1, 1]} : vector<2x128xf32> to vector<2x32xf32>
    %162 = vector.extract_strided_slice %158 {offsets = [0, 96], sizes = [2, 32], strides = [1, 1]} : vector<2x128xf32> to vector<2x32xf32>
    %163 = arith.mulf %160, %143 : vector<2x32xf32>
    %164 = arith.mulf %159, %161 : vector<2x32xf32>
    %165 = arith.addf %163, %164 : vector<2x32xf32>
    %166 = math.tanh %165 : vector<2x32xf32>
    %167 = arith.mulf %162, %166 : vector<2x32xf32>
    %c12 = arith.constant 12 : index
    %c0_44 = arith.constant 0 : index
    %168 = vector.load %arg10[%c12, %c0_44] : memref<16x32xf32, #tpu.memory_space<vmem>>, vector<2x32xf32>
    tpu.vector_store %arg10[%c12, %c0_44], %167 {strides = array<i32>} : memref<16x32xf32, #tpu.memory_space<vmem>>, vector<2x32xf32>,
    %169 = vector.extract_strided_slice %12 {offsets = [14, 0], sizes = [2, 128], strides = [1, 1]} : vector<16x128xf32> to vector<2x128xf32>
    %cst_45 = arith.constant dense<0.000000e+00> : vector<2x128xf32>
    %170 = tpu.matmul %167, %8, %cst_45 {dimension_numbers = #tpu.dot_dimension_numbers<[1], [0], [0], [1], [0, 0, 1, 1], [], []>} : vector<2x32xf32>, vector<32x128xf32>, vector<2x128xf32> -> vector<2x128xf32>
    %171 = arith.addf %169, %170 : vector<2x128xf32>
    %cst_46 = arith.constant 5.000000e-01 : f32
    %172 = vector.broadcast %cst_46 : f32 to vector<2x128xf32>
    %173 = arith.mulf %172, %171 : vector<2x128xf32>
    %174 = arith.select %5, %171, %173 : vector<2x128xi1>, vector<2x128xf32>
    %175 = math.tanh %174 : vector<2x128xf32>
    %cst_47 = arith.constant 5.000000e-01 : f32
    %176 = vector.broadcast %cst_47 : f32 to vector<2x128xf32>
    %177 = arith.mulf %176, %175 : vector<2x128xf32>
    %cst_48 = arith.constant 5.000000e-01 : f32
    %178 = vector.broadcast %cst_48 : f32 to vector<2x128xf32>
    %179 = arith.addf %177, %178 : vector<2x128xf32>
    %180 = arith.select %5, %175, %179 : vector<2x128xi1>, vector<2x128xf32>
    %181 = vector.extract_strided_slice %180 {offsets = [0, 0], sizes = [2, 32], strides = [1, 1]} : vector<2x128xf32> to vector<2x32xf32>
    %182 = vector.extract_strided_slice %180 {offsets = [0, 32], sizes = [2, 32], strides = [1, 1]} : vector<2x128xf32> to vector<2x32xf32>
    %183 = vector.extract_strided_slice %180 {offsets = [0, 64], sizes = [2, 32], strides = [1, 1]} : vector<2x128xf32> to vector<2x32xf32>
    %184 = vector.extract_strided_slice %180 {offsets = [0, 96], sizes = [2, 32], strides = [1, 1]} : vector<2x128xf32> to vector<2x32xf32>
    %185 = arith.mulf %182, %165 : vector<2x32xf32>
    %186 = arith.mulf %181, %183 : vector<2x32xf32>
    %187 = arith.addf %185, %186 : vector<2x32xf32>
    %188 = math.tanh %187 : vector<2x32xf32>
    %189 = arith.mulf %184, %188 : vector<2x32xf32>
    %c14 = arith.constant 14 : index
    %c0_49 = arith.constant 0 : index
    %190 = vector.load %arg10[%c14, %c0_49] : memref<16x32xf32, #tpu.memory_space<vmem>>, vector<2x32xf32>
    tpu.vector_store %arg10[%c14, %c0_49], %189 {strides = array<i32>} : memref<16x32xf32, #tpu.memory_space<vmem>>, vector<2x32xf32>,
    %c0_50 = arith.constant 0 : index
    %c0_51 = arith.constant 0 : index
    %191 = vector.load %arg10[%c0_50, %c0_51] : memref<16x32xf32, #tpu.memory_space<vmem>>, vector<16x32xf32>
    %c0_52 = arith.constant 0 : index
    %c0_53 = arith.constant 0 : index
    %192 = vector.load %arg4[%c0_52, %c0_53] : memref<32x128xf32, #tpu.memory_space<vmem>>, vector<32x128xf32>
    %c0_54 = arith.constant 0 : index
    %c0_55 = arith.constant 0 : index
    %193 = vector.load %arg5[%c0_54, %c0_55] : memref<32x128xf32, #tpu.memory_space<vmem>>, vector<32x128xf32>
    %c0_56 = arith.constant 0 : index
    %c0_57 = arith.constant 0 : index
    %194 = vector.load %arg6[%c0_56, %c0_57] : memref<1x128xf32, #tpu.memory_space<vmem>>, vector<1x128xf32>
    %cst_58 = arith.constant dense<0.000000e+00> : vector<16x128xf32>
    %195 = tpu.matmul %191, %192, %cst_58 {dimension_numbers = #tpu.dot_dimension_numbers<[1], [0], [0], [1], [0, 0, 1, 1], [], []>} : vector<16x32xf32>, vector<32x128xf32>, vector<16x128xf32> -> vector<16x128xf32>
    %196 = vector.broadcast %194 : vector<1x128xf32> to vector<16x128xf32>
    %197 = arith.addf %195, %196 : vector<16x128xf32>
    %cst_59 = arith.constant 0.000000e+00 : f32
    %198 = vector.broadcast %cst_59 : f32 to vector<2x32xf32>
    %cst_60 = arith.constant 0.000000e+00 : f32
    %199 = vector.broadcast %cst_60 : f32 to vector<2x32xf32>
    %200 = vector.extract_strided_slice %197 {offsets = [0, 0], sizes = [2, 128], strides = [1, 1]} : vector<16x128xf32> to vector<2x128xf32>
    %cst_61 = arith.constant dense<0.000000e+00> : vector<2x128xf32>
    %201 = tpu.matmul %198, %193, %cst_61 {dimension_numbers = #tpu.dot_dimension_numbers<[1], [0], [0], [1], [0, 0, 1, 1], [], []>} : vector<2x32xf32>, vector<32x128xf32>, vector<2x128xf32> -> vector<2x128xf32>
    %202 = arith.addf %200, %201 : vector<2x128xf32>
    %cst_62 = arith.constant 5.000000e-01 : f32
    %203 = vector.broadcast %cst_62 : f32 to vector<2x128xf32>
    %204 = arith.mulf %203, %202 : vector<2x128xf32>
    %205 = arith.select %5, %202, %204 : vector<2x128xi1>, vector<2x128xf32>
    %206 = math.tanh %205 : vector<2x128xf32>
    %cst_63 = arith.constant 5.000000e-01 : f32
    %207 = vector.broadcast %cst_63 : f32 to vector<2x128xf32>
    %208 = arith.mulf %207, %206 : vector<2x128xf32>
    %cst_64 = arith.constant 5.000000e-01 : f32
    %209 = vector.broadcast %cst_64 : f32 to vector<2x128xf32>
    %210 = arith.addf %208, %209 : vector<2x128xf32>
    %211 = arith.select %5, %206, %210 : vector<2x128xi1>, vector<2x128xf32>
    %212 = vector.extract_strided_slice %211 {offsets = [0, 0], sizes = [2, 32], strides = [1, 1]} : vector<2x128xf32> to vector<2x32xf32>
    %213 = vector.extract_strided_slice %211 {offsets = [0, 32], sizes = [2, 32], strides = [1, 1]} : vector<2x128xf32> to vector<2x32xf32>
    %214 = vector.extract_strided_slice %211 {offsets = [0, 64], sizes = [2, 32], strides = [1, 1]} : vector<2x128xf32> to vector<2x32xf32>
    %215 = vector.extract_strided_slice %211 {offsets = [0, 96], sizes = [2, 32], strides = [1, 1]} : vector<2x128xf32> to vector<2x32xf32>
    %216 = arith.mulf %213, %199 : vector<2x32xf32>
    %217 = arith.mulf %212, %214 : vector<2x32xf32>
    %218 = arith.addf %216, %217 : vector<2x32xf32>
    %219 = math.tanh %218 : vector<2x32xf32>
    %220 = arith.mulf %215, %219 : vector<2x32xf32>
    %221 = vector.extract_strided_slice %197 {offsets = [2, 0], sizes = [2, 128], strides = [1, 1]} : vector<16x128xf32> to vector<2x128xf32>
    %cst_65 = arith.constant dense<0.000000e+00> : vector<2x128xf32>
    %222 = tpu.matmul %220, %193, %cst_65 {dimension_numbers = #tpu.dot_dimension_numbers<[1], [0], [0], [1], [0, 0, 1, 1], [], []>} : vector<2x32xf32>, vector<32x128xf32>, vector<2x128xf32> -> vector<2x128xf32>
    %223 = arith.addf %221, %222 : vector<2x128xf32>
    %cst_66 = arith.constant 5.000000e-01 : f32
    %224 = vector.broadcast %cst_66 : f32 to vector<2x128xf32>
    %225 = arith.mulf %224, %223 : vector<2x128xf32>
    %226 = arith.select %5, %223, %225 : vector<2x128xi1>, vector<2x128xf32>
    %227 = math.tanh %226 : vector<2x128xf32>
    %cst_67 = arith.constant 5.000000e-01 : f32
    %228 = vector.broadcast %cst_67 : f32 to vector<2x128xf32>
    %229 = arith.mulf %228, %227 : vector<2x128xf32>
    %cst_68 = arith.constant 5.000000e-01 : f32
    %230 = vector.broadcast %cst_68 : f32 to vector<2x128xf32>
    %231 = arith.addf %229, %230 : vector<2x128xf32>
    %232 = arith.select %5, %227, %231 : vector<2x128xi1>, vector<2x128xf32>
    %233 = vector.extract_strided_slice %232 {offsets = [0, 0], sizes = [2, 32], strides = [1, 1]} : vector<2x128xf32> to vector<2x32xf32>
    %234 = vector.extract_strided_slice %232 {offsets = [0, 32], sizes = [2, 32], strides = [1, 1]} : vector<2x128xf32> to vector<2x32xf32>
    %235 = vector.extract_strided_slice %232 {offsets = [0, 64], sizes = [2, 32], strides = [1, 1]} : vector<2x128xf32> to vector<2x32xf32>
    %236 = vector.extract_strided_slice %232 {offsets = [0, 96], sizes = [2, 32], strides = [1, 1]} : vector<2x128xf32> to vector<2x32xf32>
    %237 = arith.mulf %234, %218 : vector<2x32xf32>
    %238 = arith.mulf %233, %235 : vector<2x32xf32>
    %239 = arith.addf %237, %238 : vector<2x32xf32>
    %240 = math.tanh %239 : vector<2x32xf32>
    %241 = arith.mulf %236, %240 : vector<2x32xf32>
    %242 = vector.extract_strided_slice %197 {offsets = [4, 0], sizes = [2, 128], strides = [1, 1]} : vector<16x128xf32> to vector<2x128xf32>
    %cst_69 = arith.constant dense<0.000000e+00> : vector<2x128xf32>
    %243 = tpu.matmul %241, %193, %cst_69 {dimension_numbers = #tpu.dot_dimension_numbers<[1], [0], [0], [1], [0, 0, 1, 1], [], []>} : vector<2x32xf32>, vector<32x128xf32>, vector<2x128xf32> -> vector<2x128xf32>
    %244 = arith.addf %242, %243 : vector<2x128xf32>
    %cst_70 = arith.constant 5.000000e-01 : f32
    %245 = vector.broadcast %cst_70 : f32 to vector<2x128xf32>
    %246 = arith.mulf %245, %244 : vector<2x128xf32>
    %247 = arith.select %5, %244, %246 : vector<2x128xi1>, vector<2x128xf32>
    %248 = math.tanh %247 : vector<2x128xf32>
    %cst_71 = arith.constant 5.000000e-01 : f32
    %249 = vector.broadcast %cst_71 : f32 to vector<2x128xf32>
    %250 = arith.mulf %249, %248 : vector<2x128xf32>
    %cst_72 = arith.constant 5.000000e-01 : f32
    %251 = vector.broadcast %cst_72 : f32 to vector<2x128xf32>
    %252 = arith.addf %250, %251 : vector<2x128xf32>
    %253 = arith.select %5, %248, %252 : vector<2x128xi1>, vector<2x128xf32>
    %254 = vector.extract_strided_slice %253 {offsets = [0, 0], sizes = [2, 32], strides = [1, 1]} : vector<2x128xf32> to vector<2x32xf32>
    %255 = vector.extract_strided_slice %253 {offsets = [0, 32], sizes = [2, 32], strides = [1, 1]} : vector<2x128xf32> to vector<2x32xf32>
    %256 = vector.extract_strided_slice %253 {offsets = [0, 64], sizes = [2, 32], strides = [1, 1]} : vector<2x128xf32> to vector<2x32xf32>
    %257 = vector.extract_strided_slice %253 {offsets = [0, 96], sizes = [2, 32], strides = [1, 1]} : vector<2x128xf32> to vector<2x32xf32>
    %258 = arith.mulf %255, %239 : vector<2x32xf32>
    %259 = arith.mulf %254, %256 : vector<2x32xf32>
    %260 = arith.addf %258, %259 : vector<2x32xf32>
    %261 = math.tanh %260 : vector<2x32xf32>
    %262 = arith.mulf %257, %261 : vector<2x32xf32>
    %263 = vector.extract_strided_slice %197 {offsets = [6, 0], sizes = [2, 128], strides = [1, 1]} : vector<16x128xf32> to vector<2x128xf32>
    %cst_73 = arith.constant dense<0.000000e+00> : vector<2x128xf32>
    %264 = tpu.matmul %262, %193, %cst_73 {dimension_numbers = #tpu.dot_dimension_numbers<[1], [0], [0], [1], [0, 0, 1, 1], [], []>} : vector<2x32xf32>, vector<32x128xf32>, vector<2x128xf32> -> vector<2x128xf32>
    %265 = arith.addf %263, %264 : vector<2x128xf32>
    %cst_74 = arith.constant 5.000000e-01 : f32
    %266 = vector.broadcast %cst_74 : f32 to vector<2x128xf32>
    %267 = arith.mulf %266, %265 : vector<2x128xf32>
    %268 = arith.select %5, %265, %267 : vector<2x128xi1>, vector<2x128xf32>
    %269 = math.tanh %268 : vector<2x128xf32>
    %cst_75 = arith.constant 5.000000e-01 : f32
    %270 = vector.broadcast %cst_75 : f32 to vector<2x128xf32>
    %271 = arith.mulf %270, %269 : vector<2x128xf32>
    %cst_76 = arith.constant 5.000000e-01 : f32
    %272 = vector.broadcast %cst_76 : f32 to vector<2x128xf32>
    %273 = arith.addf %271, %272 : vector<2x128xf32>
    %274 = arith.select %5, %269, %273 : vector<2x128xi1>, vector<2x128xf32>
    %275 = vector.extract_strided_slice %274 {offsets = [0, 0], sizes = [2, 32], strides = [1, 1]} : vector<2x128xf32> to vector<2x32xf32>
    %276 = vector.extract_strided_slice %274 {offsets = [0, 32], sizes = [2, 32], strides = [1, 1]} : vector<2x128xf32> to vector<2x32xf32>
    %277 = vector.extract_strided_slice %274 {offsets = [0, 64], sizes = [2, 32], strides = [1, 1]} : vector<2x128xf32> to vector<2x32xf32>
    %278 = vector.extract_strided_slice %274 {offsets = [0, 96], sizes = [2, 32], strides = [1, 1]} : vector<2x128xf32> to vector<2x32xf32>
    %279 = arith.mulf %276, %260 : vector<2x32xf32>
    %280 = arith.mulf %275, %277 : vector<2x32xf32>
    %281 = arith.addf %279, %280 : vector<2x32xf32>
    %282 = math.tanh %281 : vector<2x32xf32>
    %283 = arith.mulf %278, %282 : vector<2x32xf32>
    %284 = vector.extract_strided_slice %197 {offsets = [8, 0], sizes = [2, 128], strides = [1, 1]} : vector<16x128xf32> to vector<2x128xf32>
    %cst_77 = arith.constant dense<0.000000e+00> : vector<2x128xf32>
    %285 = tpu.matmul %283, %193, %cst_77 {dimension_numbers = #tpu.dot_dimension_numbers<[1], [0], [0], [1], [0, 0, 1, 1], [], []>} : vector<2x32xf32>, vector<32x128xf32>, vector<2x128xf32> -> vector<2x128xf32>
    %286 = arith.addf %284, %285 : vector<2x128xf32>
    %cst_78 = arith.constant 5.000000e-01 : f32
    %287 = vector.broadcast %cst_78 : f32 to vector<2x128xf32>
    %288 = arith.mulf %287, %286 : vector<2x128xf32>
    %289 = arith.select %5, %286, %288 : vector<2x128xi1>, vector<2x128xf32>
    %290 = math.tanh %289 : vector<2x128xf32>
    %cst_79 = arith.constant 5.000000e-01 : f32
    %291 = vector.broadcast %cst_79 : f32 to vector<2x128xf32>
    %292 = arith.mulf %291, %290 : vector<2x128xf32>
    %cst_80 = arith.constant 5.000000e-01 : f32
    %293 = vector.broadcast %cst_80 : f32 to vector<2x128xf32>
    %294 = arith.addf %292, %293 : vector<2x128xf32>
    %295 = arith.select %5, %290, %294 : vector<2x128xi1>, vector<2x128xf32>
    %296 = vector.extract_strided_slice %295 {offsets = [0, 0], sizes = [2, 32], strides = [1, 1]} : vector<2x128xf32> to vector<2x32xf32>
    %297 = vector.extract_strided_slice %295 {offsets = [0, 32], sizes = [2, 32], strides = [1, 1]} : vector<2x128xf32> to vector<2x32xf32>
    %298 = vector.extract_strided_slice %295 {offsets = [0, 64], sizes = [2, 32], strides = [1, 1]} : vector<2x128xf32> to vector<2x32xf32>
    %299 = vector.extract_strided_slice %295 {offsets = [0, 96], sizes = [2, 32], strides = [1, 1]} : vector<2x128xf32> to vector<2x32xf32>
    %300 = arith.mulf %297, %281 : vector<2x32xf32>
    %301 = arith.mulf %296, %298 : vector<2x32xf32>
    %302 = arith.addf %300, %301 : vector<2x32xf32>
    %303 = math.tanh %302 : vector<2x32xf32>
    %304 = arith.mulf %299, %303 : vector<2x32xf32>
    %305 = vector.extract_strided_slice %197 {offsets = [10, 0], sizes = [2, 128], strides = [1, 1]} : vector<16x128xf32> to vector<2x128xf32>
    %cst_81 = arith.constant dense<0.000000e+00> : vector<2x128xf32>
    %306 = tpu.matmul %304, %193, %cst_81 {dimension_numbers = #tpu.dot_dimension_numbers<[1], [0], [0], [1], [0, 0, 1, 1], [], []>} : vector<2x32xf32>, vector<32x128xf32>, vector<2x128xf32> -> vector<2x128xf32>
    %307 = arith.addf %305, %306 : vector<2x128xf32>
    %cst_82 = arith.constant 5.000000e-01 : f32
    %308 = vector.broadcast %cst_82 : f32 to vector<2x128xf32>
    %309 = arith.mulf %308, %307 : vector<2x128xf32>
    %310 = arith.select %5, %307, %309 : vector<2x128xi1>, vector<2x128xf32>
    %311 = math.tanh %310 : vector<2x128xf32>
    %cst_83 = arith.constant 5.000000e-01 : f32
    %312 = vector.broadcast %cst_83 : f32 to vector<2x128xf32>
    %313 = arith.mulf %312, %311 : vector<2x128xf32>
    %cst_84 = arith.constant 5.000000e-01 : f32
    %314 = vector.broadcast %cst_84 : f32 to vector<2x128xf32>
    %315 = arith.addf %313, %314 : vector<2x128xf32>
    %316 = arith.select %5, %311, %315 : vector<2x128xi1>, vector<2x128xf32>
    %317 = vector.extract_strided_slice %316 {offsets = [0, 0], sizes = [2, 32], strides = [1, 1]} : vector<2x128xf32> to vector<2x32xf32>
    %318 = vector.extract_strided_slice %316 {offsets = [0, 32], sizes = [2, 32], strides = [1, 1]} : vector<2x128xf32> to vector<2x32xf32>
    %319 = vector.extract_strided_slice %316 {offsets = [0, 64], sizes = [2, 32], strides = [1, 1]} : vector<2x128xf32> to vector<2x32xf32>
    %320 = vector.extract_strided_slice %316 {offsets = [0, 96], sizes = [2, 32], strides = [1, 1]} : vector<2x128xf32> to vector<2x32xf32>
    %321 = arith.mulf %318, %302 : vector<2x32xf32>
    %322 = arith.mulf %317, %319 : vector<2x32xf32>
    %323 = arith.addf %321, %322 : vector<2x32xf32>
    %324 = math.tanh %323 : vector<2x32xf32>
    %325 = arith.mulf %320, %324 : vector<2x32xf32>
    %326 = vector.extract_strided_slice %197 {offsets = [12, 0], sizes = [2, 128], strides = [1, 1]} : vector<16x128xf32> to vector<2x128xf32>
    %cst_85 = arith.constant dense<0.000000e+00> : vector<2x128xf32>
    %327 = tpu.matmul %325, %193, %cst_85 {dimension_numbers = #tpu.dot_dimension_numbers<[1], [0], [0], [1], [0, 0, 1, 1], [], []>} : vector<2x32xf32>, vector<32x128xf32>, vector<2x128xf32> -> vector<2x128xf32>
    %328 = arith.addf %326, %327 : vector<2x128xf32>
    %cst_86 = arith.constant 5.000000e-01 : f32
    %329 = vector.broadcast %cst_86 : f32 to vector<2x128xf32>
    %330 = arith.mulf %329, %328 : vector<2x128xf32>
    %331 = arith.select %5, %328, %330 : vector<2x128xi1>, vector<2x128xf32>
    %332 = math.tanh %331 : vector<2x128xf32>
    %cst_87 = arith.constant 5.000000e-01 : f32
    %333 = vector.broadcast %cst_87 : f32 to vector<2x128xf32>
    %334 = arith.mulf %333, %332 : vector<2x128xf32>
    %cst_88 = arith.constant 5.000000e-01 : f32
    %335 = vector.broadcast %cst_88 : f32 to vector<2x128xf32>
    %336 = arith.addf %334, %335 : vector<2x128xf32>
    %337 = arith.select %5, %332, %336 : vector<2x128xi1>, vector<2x128xf32>
    %338 = vector.extract_strided_slice %337 {offsets = [0, 0], sizes = [2, 32], strides = [1, 1]} : vector<2x128xf32> to vector<2x32xf32>
    %339 = vector.extract_strided_slice %337 {offsets = [0, 32], sizes = [2, 32], strides = [1, 1]} : vector<2x128xf32> to vector<2x32xf32>
    %340 = vector.extract_strided_slice %337 {offsets = [0, 64], sizes = [2, 32], strides = [1, 1]} : vector<2x128xf32> to vector<2x32xf32>
    %341 = vector.extract_strided_slice %337 {offsets = [0, 96], sizes = [2, 32], strides = [1, 1]} : vector<2x128xf32> to vector<2x32xf32>
    %342 = arith.mulf %339, %323 : vector<2x32xf32>
    %343 = arith.mulf %338, %340 : vector<2x32xf32>
    %344 = arith.addf %342, %343 : vector<2x32xf32>
    %345 = math.tanh %344 : vector<2x32xf32>
    %346 = arith.mulf %341, %345 : vector<2x32xf32>
    %347 = vector.extract_strided_slice %197 {offsets = [14, 0], sizes = [2, 128], strides = [1, 1]} : vector<16x128xf32> to vector<2x128xf32>
    %cst_89 = arith.constant dense<0.000000e+00> : vector<2x128xf32>
    %348 = tpu.matmul %346, %193, %cst_89 {dimension_numbers = #tpu.dot_dimension_numbers<[1], [0], [0], [1], [0, 0, 1, 1], [], []>} : vector<2x32xf32>, vector<32x128xf32>, vector<2x128xf32> -> vector<2x128xf32>
    %349 = arith.addf %347, %348 : vector<2x128xf32>
    %cst_90 = arith.constant 5.000000e-01 : f32
    %350 = vector.broadcast %cst_90 : f32 to vector<2x128xf32>
    %351 = arith.mulf %350, %349 : vector<2x128xf32>
    %352 = arith.select %5, %349, %351 : vector<2x128xi1>, vector<2x128xf32>
    %353 = math.tanh %352 : vector<2x128xf32>
    %cst_91 = arith.constant 5.000000e-01 : f32
    %354 = vector.broadcast %cst_91 : f32 to vector<2x128xf32>
    %355 = arith.mulf %354, %353 : vector<2x128xf32>
    %cst_92 = arith.constant 5.000000e-01 : f32
    %356 = vector.broadcast %cst_92 : f32 to vector<2x128xf32>
    %357 = arith.addf %355, %356 : vector<2x128xf32>
    %358 = arith.select %5, %353, %357 : vector<2x128xi1>, vector<2x128xf32>
    %359 = vector.extract_strided_slice %358 {offsets = [0, 0], sizes = [2, 32], strides = [1, 1]} : vector<2x128xf32> to vector<2x32xf32>
    %360 = vector.extract_strided_slice %358 {offsets = [0, 32], sizes = [2, 32], strides = [1, 1]} : vector<2x128xf32> to vector<2x32xf32>
    %361 = vector.extract_strided_slice %358 {offsets = [0, 64], sizes = [2, 32], strides = [1, 1]} : vector<2x128xf32> to vector<2x32xf32>
    %362 = vector.extract_strided_slice %358 {offsets = [0, 96], sizes = [2, 32], strides = [1, 1]} : vector<2x128xf32> to vector<2x32xf32>
    %363 = arith.mulf %360, %344 : vector<2x32xf32>
    %364 = arith.mulf %359, %361 : vector<2x32xf32>
    %365 = arith.addf %363, %364 : vector<2x32xf32>
    %366 = math.tanh %365 : vector<2x32xf32>
    %367 = arith.mulf %362, %366 : vector<2x32xf32>
    %c0_93 = arith.constant 0 : index
    %c0_94 = arith.constant 0 : index
    %368 = vector.load %arg7[%c0_93, %c0_94] : memref<32x4xf32, #tpu.memory_space<vmem>>, vector<32x4xf32>
    %cst_95 = arith.constant dense<0.000000e+00> : vector<2x4xf32>
    %369 = tpu.matmul %367, %368, %cst_95 {dimension_numbers = #tpu.dot_dimension_numbers<[1], [0], [0], [1], [0, 0, 1, 1], [], []>} : vector<2x32xf32>, vector<32x4xf32>, vector<2x4xf32> -> vector<2x4xf32>
    %c0_96 = arith.constant 0 : index
    %c0_97 = arith.constant 0 : index
    %370 = vector.load %arg8[%c0_96, %c0_97] : memref<1x4xf32, #tpu.memory_space<vmem>>, vector<1x4xf32>
    %371 = vector.broadcast %370 : vector<1x4xf32> to vector<2x4xf32>
    %372 = arith.addf %369, %371 : vector<2x4xf32>
    %c0_98 = arith.constant 0 : index
    %c0_99 = arith.constant 0 : index
    %373 = vector.load %arg9[%c0_98, %c0_99] : memref<2x4xf32, #tpu.memory_space<vmem>>, vector<2x4xf32>
    tpu.vector_store %arg9[%c0_98, %c0_99], %372 {strides = array<i32>} : memref<2x4xf32, #tpu.memory_space<vmem>>, vector<2x4xf32>,
    return
  }
}

</mosaic_0001>

<bundles_post_ra>
// kernel: weather_lstm_forward.1
= control target key start
LH: loop header
LB: loop body
LE: loop exit
PB: predicated region body
PF: predicated region fallthrough
CT: control target
= control target key end

     0   :  { %14 = vsyncpa [#allocation4], 0  ;;  %s1651_s0 = inlined_call_operand.vmem [shape: f32[16,4], index: 0, kind: input, shape index: {}]   ;;  %s1652_s1 = inlined_call_operand.vmem [shape: f32[4,128], index: 1, kind: input, shape index: {}]   ;;  %s1653_s2 = inlined_call_operand.vmem [shape: f32[32,128], index: 2, kind: input, shape index: {}]   ;;  %s1654_s3 = inlined_call_operand.vmem [shape: f32[1,128], index: 3, kind: input, shape index: {}]   ;;  %s1655_s4 = inlined_call_operand.hbm [shape: f32[32,128], index: 4, kind: input, shape index: {}]   ;;  %s1656_s5 = inlined_call_operand.hbm [shape: f32[32,128], index: 5, kind: input, shape index: {}]   ;;  %s1657_s6 = inlined_call_operand.vmem [shape: f32[1,128], index: 6, kind: input, shape index: {}]   ;;  %s1658_s7 = inlined_call_operand.vmem [shape: f32[32,4], index: 7, kind: input, shape index: {}]   ;;  %s1659_s8 = inlined_call_operand.vmem [shape: f32[1,4], index: 8, kind: input, shape index: {}]   ;;  %s1660_s9 = inlined_call_operand.hbm [shape: f32[2,4], index: 9, kind: output, shape index: {}]  }
   0x1   :  { %15 = vsyncpa [#allocation7], 0 }
   0x2   :  { %16 = vsyncpa [#allocation5], 0  ;;  %s29_s11 = sshll.u32 %s1655_s4, 4  ;;  %s1284_s12 = smov [#allocation3]   ;;  %s30_s11 = int_to_ptr.hbm [resolvable:$true] %s29_s11 }
   0x3   :  { %s31_s13 = sshll.u32 %s1284_s12, 4  ;;  %s42_s16 = sshll.u32 %s1656_s5, 4  ;;  %s32_s13 = int_to_ptr.vmem [resolvable:$true] %s31_s13  ;;  %s43_s16 = int_to_ptr.hbm [resolvable:$true] %s42_s16 }
   0x4   :  { %s1285_s17 = smov 128   ;;  %s1286_s18 = smov 8  }
   0x5   :  { %37 = dma.hbm_to_vmem [thread:$0]  %s30_s11, 512, %s32_s13, [#allocation4], %s1285_s17, %s1285_s17, %s1286_s18  }
   0x6   :  { %s1287_s19 = smov [#allocation6]  }
   0x7   :  { %s44_s20 = sshll.u32 %s1287_s19, 4  ;;  %s45_s20 = int_to_ptr.vmem [resolvable:$true] %s44_s20 }
   0x8   :  { %50 = dma.hbm_to_vmem [thread:$0]  %s43_s16, 512, %s45_s20, [#allocation7], %s1285_s17, %s1285_s17, %s1286_s18  }
   0x9   :  { %1278 = dma.done.wait [#allocation4], 512  }
   0xa   :  { %1279 = vsyncadd [#allocation4], 4294966784 }
   0xb   :  { %1280 = dma.done.wait [#allocation7], 512  }
   0xc   :  { %1281 = vsyncadd [#allocation7], 4294966784  ;;  %vm88_vm0 = vcmask 1043456   ;;  %vm81_vm1 = vcmask 31744   ;;  %v76_v0 = vld [vmem:[%s1653_s2 + $0x18] sm:$0xff]  ;;  %v75_v1 = vld [vmem:[%s1653_s2 + $0x10] sm:$0xff]  ;;  %v65_v7 = vlaneseq }
   0xd   :  { %v72_v2 = vld [vmem:[%s1652_s1] sm:$0xf]  ;;  %131 = vmatpush.msra.mxu1 %v76_v0  ;;  %v74_v4 = vld [vmem:[%s1653_s2 + $0x8] sm:$0xff]  ;;  %183 = vmatpush.msra.mxu2 %v76_v0  ;;  %v1288_v6 = vmov 0.0   ;;  %s1290_s10 = smov 32   ;;  %vm167_vm5 = vcmask 254976  }
   0xe   :  { %1111 = vmatpush.msk.msra.mxu0 %vm88_vm0, %v72_v2  ;;  %v70_v3 = vld [vmem:[%s1651_s0] sm:$0xff]  ;;  %244 = vmatpush.msra.mxu3 %v76_v0  ;;  %v66_v10 = vand.u32 127, %v65_v7  ;;  %vm115_vm6 = vcmask 261120   ;;  %vm225_vm7 = vcmask 257026   ;;  %vm286_vm8 = vcmask 259076   ;;  %v1059_v14 = vld [vmem:[%s1658_s7 + $0x10] sm:$0xff] }
   0xf   :  { %1112 = vmatmul.msk.f32.vlgmr.msra.gmra.mxu0 %vm81_vm1, %v70_v3  ;;  %132 = vmatpush.msra.mxu1 %v75_v1  ;;  %v73_v5 = vld [vmem:[%s1653_s2] sm:$0xff]  ;;  %vm347_vm9 = vcmask 261126   ;;  %s1291_s22 = smov [#allocation8]   ;;  %vm1091_vm10 = vcmask 25600  }
  0x10   :  { %184 = vmatpush.msra.mxu2 %v75_v1  ;;  %480 = vmatpush.msrb.mxu0 %v76_v0  ;;  %v1371_v8 = vld [vmem:[%s1654_s3] ss:$0 sm:$0xff]  ;;  %vm67_vm2 = vcmp.ge.s32.totalorder %v66_v10, 64  ;;  %vm68_vm3 = vcmp.lt.s32.totalorder %v66_v10, 96  ;;  %s1289_s3 = smov 64   ;;  %s1098_s5 = sshll.u32 %s1291_s22, 4  ;;  %s1099_s5 = int_to_ptr.vmem [resolvable:$true] %s1098_s5 }
  0x11   :  { %133 = vmatpush.msra.mxu1 %v74_v4  ;;  %245 = vmatpush.msra.mxu3 %v75_v1  ;;  %vm1377_vm4 = vmand %vm67_vm2, %vm68_vm3 }
  0x12   :  { %185 = vmatpush.msra.mxu2 %v74_v4  ;;  %481 = vmatpush.msrb.mxu0 %v75_v1 }
  0x13   :  { %134 = vmatpush.msra.mxu1 %v73_v5  ;;  %246 = vmatpush.msra.mxu3 %v74_v4 }
  0x14   :  { %135 = vmatmul.f32.vlgmr.msra.gmra.mxu1 %v1288_v6  ;;  %186 = vmatpush.msra.mxu2 %v73_v5 }
  0x15   :  { %247 = vmatpush.msra.mxu3 %v73_v5  ;;  %305 = vmatpush.msrb.mxu1 %v76_v0 }
  0x16   :  { %366 = vmatpush.msrb.mxu2 %v76_v0  ;;  %482 = vmatpush.msrb.mxu0 %v74_v4 }
  0x17   :  { %420 = vmatpush.msrb.mxu3 %v76_v0  ;;  %306 = vmatpush.msrb.mxu1 %v75_v1 }
  0x18   :  { %367 = vmatpush.msrb.mxu2 %v75_v1  ;;  %483 = vmatpush.msrb.mxu0 %v73_v5 }
  0x19   :  { %421 = vmatpush.msrb.mxu3 %v75_v1  ;;  %307 = vmatpush.msrb.mxu1 %v74_v4 }
  0x1a   :  { %368 = vmatpush.msrb.mxu2 %v74_v4 }
  0x1b   :  { %422 = vmatpush.msrb.mxu3 %v74_v4  ;;  %308 = vmatpush.msrb.mxu1 %v73_v5 }
  0x1c   :  { %369 = vmatpush.msrb.mxu2 %v73_v5 }
  0x1d   :  { %423 = vmatpush.msrb.mxu3 %v73_v5  ;;  %540 = vmatpush.msra.mxu1 %v76_v0 }
  0x1f   :  { %541 = vmatpush.msra.mxu1 %v75_v1 }
  0x21   :  { %542 = vmatpush.msra.mxu1 %v74_v4 }
  0x23   :  { %543 = vmatpush.msra.mxu1 %v73_v5 }
  0x8c   :  { %v109_v9 = vpop.f32.mrf.mxu0 }
  0x8d   :  { %v1374_v11 = vadd.f32 %v1371_v8, %v109_v9 }
  0x91   :  { %v136_v12 = vpop.f32.mrf.mxu1 }
  0x92   :  { %v139_v13 = vadd.f32 %v136_v12, %v1374_v11 }
  0x94   :  { %v140_v15 = vmul.f32 0.5, %v139_v13 }
  0x96   :  { %v141_v16 = vsel %vm1377_vm4, %v139_v13, %v140_v15 }
  0x97   :  { %1142 = vtanh.f32 %v141_v16 }
  0x9d   :  { %v1143_v17 = vpop.eup %1142 }
  0x9e   :  { %v143_v18 = vmul.f32 0.5, %v1143_v17 }
  0xa0   :  { %v144_v19 = vadd.f32 0.5, %v143_v18 }
  0xa2   :  { %v145_v20 = vsel %vm1377_vm4, %v1143_v17, %v144_v19 }
  0xa3   :  { %148 = vrot.lane.b32.xlu0 %v145_v20, %s1289_s3  ;;  %v146_v23 = vmul.f32 0.0, %v145_v20 }
 0x115   :  { %v149_v21 = vpop.permute.xlu0 %148 }
 0x116   :  { %v151_v22 = vmul.f32 %v149_v21, %v145_v20 }
 0x118   :  { %153 = vrot.lane.b32.xlu0 %v151_v22, %s1290_s10 }
 0x18a   :  { %v154_v24 = vpop.permute.xlu0 %153 }
 0x18b   :  { %v156_v25 = vadd.f32 %v154_v24, %v146_v23 }
 0x18d   :  { %1144 = vtanh.f32 %v156_v25  ;;  %v202_v41 = vrot.slane %v156_v25, 6 }
 0x193   :  { %v1145_v26 = vpop.eup %1144 }
 0x194   :  { %159 = vrot.lane.b32.xlu1 %v1145_v26, %s1289_s3 }
 0x206   :  { %v160_v27 = vpop.permute.xlu1 %159 }
 0x207   :  { %v162_v28 = vmul.f32 %v160_v27, %v145_v20 }
 0x209   :  { %164 = vrot.lane.b32.xlu1 %v162_v28, %s1290_s10  ;;  %v71_v28 = vld [vmem:[%s1651_s0 + $0x8] sm:$0xff] }
 0x20a   :  { %1113 = vmatmul.msk.f32.gmra.mxu0 %vm81_vm1, %v71_v28 }
 0x27b   :  { %v165_v29 = vpop.permute.xlu1 %164 }
 0x27c   :  { %168 = vst.msk [vmem:[#allocation2] sm:$0x3] %vm167_vm5, %v165_v29  ;;  %1114 = vmatmul.msk.f32.vlgmr.msra.gmra.mxu2 %vm115_vm6, %v165_v29 }
 0x2ff   :  { %v188_v30 = vpop.f32.mrf.mxu2 }
 0x300   :  { %v192_v31 = vrot.slane %v188_v30, 6  ;;  %v112_v30 = vpop.f32.mrf.mxu0 }
 0x302   :  { %v194_v32 = vadd.f32 %v192_v31, %v1374_v11  ;;  %v1429_v31 = vadd.f32 %v1371_v8, %v112_v30 }
 0x304   :  { %v195_v33 = vmul.f32 0.5, %v194_v32 }
 0x306   :  { %v196_v34 = vsel %vm1377_vm4, %v194_v32, %v195_v33 }
 0x307   :  { %1146 = vtanh.f32 %v196_v34 }
 0x30d   :  { %v1147_v35 = vpop.eup %1146 }
 0x30e   :  { %v198_v36 = vmul.f32 0.5, %v1147_v35 }
 0x310   :  { %v199_v37 = vadd.f32 0.5, %v198_v36 }
 0x312   :  { %v200_v38 = vsel %vm1377_vm4, %v1147_v35, %v199_v37 }
 0x313   :  { %206 = vrot.lane.b32.xlu2 %v200_v38, %s1289_s3  ;;  %v204_v42 = vmul.f32 %v202_v41, %v200_v38 }
 0x36d   :  { %v207_v39 = vpop.permute.xlu2 %206 }
 0x36e   :  { %v209_v40 = vmul.f32 %v207_v39, %v200_v38 }
 0x370   :  { %211 = vrot.lane.b32.xlu2 %v209_v40, %s1290_s10 }
 0x3ca   :  { %v212_v43 = vpop.permute.xlu2 %211 }
 0x3cb   :  { %v214_v44 = vadd.f32 %v212_v43, %v204_v42 }
 0x3cd   :  { %1148 = vtanh.f32 %v214_v44  ;;  %v263_v61 = vrot.slane %v214_v44, 6 }
 0x3d3   :  { %v1149_v45 = vpop.eup %1148 }
 0x3d4   :  { %217 = vrot.lane.b32.xlu0 %v1149_v45, %s1289_s3 }
 0x446   :  { %v218_v46 = vpop.permute.xlu0 %217 }
 0x447   :  { %v1399_v47 = vmul.f32 %v218_v46, %v200_v38 }
 0x449   :  { %v227_v48 = vrot.slane %v1399_v47, 2 }
 0x44b   :  { %228 = vrot.lane.b32.xlu1 %v227_v48, %s1290_s10 }
 0x4bd   :  { %v229_v49 = vpop.permute.xlu1 %228 }
 0x4be   :  { %1115 = vmatmul.msk.f32.vlgmr.msra.gmra.mxu3 %vm115_vm6, %v229_v49 }
 0x541   :  { %v249_v50 = vpop.f32.mrf.mxu3 }
 0x542   :  { %v253_v51 = vrot.slane %v249_v50, 4  ;;  %v588_v50 = vld [vmem:[#allocation3 + $0x18] sm:$0xff] }
 0x543   :  { %615 = vmatpush.msra.mxu2 %v588_v50 }
 0x544   :  { %v255_v52 = vadd.f32 %v253_v51, %v1374_v11  ;;  %v587_v51 = vld [vmem:[#allocation3 + $0x10] sm:$0xff] }
 0x545   :  { %616 = vmatpush.msra.mxu2 %v587_v51 }
 0x546   :  { %v256_v53 = vmul.f32 0.5, %v255_v52 }
 0x548   :  { %v257_v54 = vsel %vm1377_vm4, %v255_v52, %v256_v53  ;;  %v1449_v52 = vld [vmem:[#allocation6 + $0x18] sm:$0xff]  ;;  %v1452_v53 = vld [vmem:[#allocation6 + $0x10] sm:$0xff] }
 0x549   :  { %1150 = vtanh.f32 %v257_v54  ;;  %638 = vmatpush.msra.mxu3 %v1449_v52  ;;  %v586_v54 = vld [vmem:[#allocation3 + $0x8] sm:$0xff]  ;;  %687 = vmatpush.msra.mxu0 %v1449_v52 }
 0x54a   :  { %617 = vmatpush.msra.mxu2 %v586_v54 }
 0x54b   :  { %639 = vmatpush.msra.mxu3 %v1452_v53  ;;  %688 = vmatpush.msra.mxu0 %v1452_v53 }
 0x54f   :  { %v1151_v55 = vpop.eup %1150 }
 0x550   :  { %v259_v56 = vmul.f32 0.5, %v1151_v55 }
 0x552   :  { %v260_v57 = vadd.f32 0.5, %v259_v56  ;;  %v585_v56 = vld [vmem:[#allocation3] sm:$0xff] }
 0x553   :  { %618 = vmatpush.msra.mxu2 %v585_v56 }
 0x554   :  { %v261_v58 = vsel %vm1377_vm4, %v1151_v55, %v260_v57  ;;  %v1454_v55 = vld [vmem:[#allocation6 + $0x8] sm:$0xff]  ;;  %v1464_v57 = vld [vmem:[#allocation6] sm:$0xff] }
 0x555   :  { %267 = vrot.lane.b32.xlu2 %v261_v58, %s1289_s3  ;;  %v265_v62 = vmul.f32 %v263_v61, %v261_v58  ;;  %640 = vmatpush.msra.mxu3 %v1454_v55 }
 0x556   :  { %689 = vmatpush.msra.mxu0 %v1454_v55 }
 0x557   :  { %641 = vmatpush.msra.mxu3 %v1464_v57 }
 0x558   :  { %690 = vmatpush.msra.mxu0 %v1464_v57 }
 0x5af   :  { %v268_v59 = vpop.permute.xlu2 %267 }
 0x5b0   :  { %v270_v60 = vmul.f32 %v268_v59, %v261_v58 }
 0x5b2   :  { %272 = vrot.lane.b32.xlu0 %v270_v60, %s1290_s10 }
 0x624   :  { %v273_v63 = vpop.permute.xlu0 %272 }
 0x625   :  { %v275_v0 = vadd.f32 %v273_v63, %v265_v62 }
 0x627   :  { %1152 = vtanh.f32 %v275_v0  ;;  %v324_v21 = vrot.slane %v275_v0, 6 }
 0x62d   :  { %v1153_v1 = vpop.eup %1152 }
 0x62e   :  { %278 = vrot.lane.b32.xlu1 %v1153_v1, %s1289_s3 }
 0x6a0   :  { %v279_v2 = vpop.permute.xlu1 %278 }
 0x6a1   :  { %v281_v3 = vmul.f32 %v279_v2, %v261_v58 }
 0x6a3   :  { %v288_v4 = vrot.slane %v281_v3, 4 }
 0x6a5   :  { %289 = vrot.lane.b32.xlu2 %v288_v4, %s1290_s10 }
 0x6ff   :  { %v290_v5 = vpop.permute.xlu2 %289 }
 0x700   :  { %1116 = vmatmul.msk.f32.vlgmr.msrb.gmra.mxu1 %vm115_vm6, %v290_v5 }
 0x701   :  { %743 = vmatpush.msrb.mxu1 %v1449_v52 }
 0x703   :  { %744 = vmatpush.msrb.mxu1 %v1452_v53 }
 0x705   :  { %745 = vmatpush.msrb.mxu1 %v1454_v55 }
 0x707   :  { %746 = vmatpush.msrb.mxu1 %v1464_v57 }
 0x77d   :  { %v310_v7 = vpop.f32.mrf.mxu1 }
 0x77e   :  { %v314_v9 = vrot.slane %v310_v7, 2 }
 0x780   :  { %v316_v10 = vadd.f32 %v314_v9, %v1374_v11 }
 0x782   :  { %v317_v12 = vmul.f32 0.5, %v316_v10 }
 0x784   :  { %v318_v13 = vsel %vm1377_vm4, %v316_v10, %v317_v12 }
 0x785   :  { %1154 = vtanh.f32 %v318_v13 }
 0x78b   :  { %v1155_v15 = vpop.eup %1154 }
 0x78c   :  { %v320_v16 = vmul.f32 0.5, %v1155_v15 }
 0x78e   :  { %v321_v17 = vadd.f32 0.5, %v320_v16 }
 0x790   :  { %v322_v18 = vsel %vm1377_vm4, %v1155_v15, %v321_v17 }
 0x791   :  { %328 = vrot.lane.b32.xlu0 %v322_v18, %s1289_s3  ;;  %v326_v22 = vmul.f32 %v324_v21, %v322_v18 }
 0x803   :  { %v329_v19 = vpop.permute.xlu0 %328 }
 0x804   :  { %v331_v20 = vmul.f32 %v329_v19, %v322_v18 }
 0x806   :  { %333 = vrot.lane.b32.xlu1 %v331_v20, %s1290_s10 }
 0x878   :  { %v334_v11 = vpop.permute.xlu1 %333 }
 0x879   :  { %v336_v23 = vadd.f32 %v334_v11, %v326_v22 }
 0x87b   :  { %1156 = vtanh.f32 %v336_v23  ;;  %v382_v8 = vrot.slane %v336_v23, 6 }
 0x881   :  { %v1157_v24 = vpop.eup %1156 }
 0x882   :  { %339 = vrot.lane.b32.xlu2 %v1157_v24, %s1289_s3 }
 0x8dc   :  { %v340_v25 = vpop.permute.xlu2 %339 }
 0x8dd   :  { %v342_v26 = vmul.f32 %v340_v25, %v322_v18 }
 0x8df   :  { %v349_v27 = vrot.slane %v342_v26, 6 }
 0x8e1   :  { %350 = vrot.lane.b32.xlu0 %v349_v27, %s1290_s10 }
 0x953   :  { %v351_v29 = vpop.permute.xlu0 %350 }
 0x954   :  { %1117 = vmatmul.msk.f32.vlgmr.msrb.gmra.mxu2 %vm115_vm6, %v351_v29 }
 0x955   :  { %963 = vmatpush.msrb.mxu2 %v1449_v52 }
 0x957   :  { %964 = vmatpush.msrb.mxu2 %v1452_v53 }
 0x959   :  { %965 = vmatpush.msrb.mxu2 %v1454_v55 }
 0x95b   :  { %966 = vmatpush.msrb.mxu2 %v1464_v57 }
 0x9d7   :  { %v371_v32 = vpop.f32.mrf.mxu2 }
 0x9d8   :  { %v374_v33 = vadd.f32 %v371_v32, %v1429_v31 }
 0x9da   :  { %v375_v34 = vmul.f32 0.5, %v374_v33 }
 0x9dc   :  { %v376_v35 = vsel %vm1377_vm4, %v374_v33, %v375_v34 }
 0x9dd   :  { %1158 = vtanh.f32 %v376_v35 }
 0x9e3   :  { %v1159_v36 = vpop.eup %1158 }
 0x9e4   :  { %v378_v37 = vmul.f32 0.5, %v1159_v36 }
 0x9e6   :  { %v379_v38 = vadd.f32 0.5, %v378_v37 }
 0x9e8   :  { %v380_v39 = vsel %vm1377_vm4, %v1159_v36, %v379_v38 }
 0x9e9   :  { %386 = vrot.lane.b32.xlu1 %v380_v39, %s1289_s3  ;;  %v384_v42 = vmul.f32 %v382_v8, %v380_v39 }
 0xa5b   :  { %v387_v40 = vpop.permute.xlu1 %386 }
 0xa5c   :  { %v389_v41 = vmul.f32 %v387_v40, %v380_v39 }
 0xa5e   :  { %391 = vrot.lane.b32.xlu2 %v389_v41, %s1290_s10 }
 0xa66   :  { %222 = vrot.lane.b32.xlu2 %v1399_v47, %s1290_s10 }
 0xab8   :  { %v392_v43 = vpop.permute.xlu2 %391 }
 0xab9   :  { %v1440_v44 = vadd.f32 %v392_v43, %v384_v42 }
 0xabb   :  { %1160 = vtanh.f32 %v1440_v44  ;;  %v439_v23 = vrot.slane %v1440_v44, 6 }
 0xac0   :  { %v223_v45 = vpop.permute.xlu2 %222 }
 0xac1   :  { %v1161_v46 = vpop.eup %1160  ;;  %226 = vst.msk [vmem:[#allocation2] sm:$0xc] %vm225_vm7, %v223_v45 }
 0xac2   :  { %397 = vrot.lane.b32.xlu0 %v1161_v46, %s1289_s3 }
 0xaca   :  { %283 = vrot.lane.b32.xlu0 %v281_v3, %s1290_s10 }
 0xb34   :  { %v398_v48 = vpop.permute.xlu0 %397 }
 0xb35   :  { %v400_v49 = vmul.f32 %v398_v48, %v380_v39 }
 0xb37   :  { %402 = vrot.lane.b32.xlu1 %v400_v49, %s1290_s10 }
 0xb3c   :  { %v284_v47 = vpop.permute.xlu0 %283 }
 0xb3d   :  { %287 = vst.msk [vmem:[#allocation2] sm:$0x30] %vm286_vm8, %v284_v47 }
 0xb3f   :  { %344 = vrot.lane.b32.xlu1 %v342_v26, %s1290_s10 }
 0xba9   :  { %v403_v58 = vpop.permute.xlu1 %402 }
 0xbaa   :  { %405 = vst.msk [vmem:[#allocation2 + $0x8] sm:$0x3] %vm167_vm5, %v403_v58  ;;  %1118 = vmatmul.msk.f32.vlgmr.msrb.gmra.mxu3 %vm115_vm6, %v403_v58 }
 0xbab   :  { %799 = vmatpush.msrb.mxu3 %v1449_v52 }
 0xbad   :  { %800 = vmatpush.msrb.mxu3 %v1452_v53 }
 0xbaf   :  { %801 = vmatpush.msrb.mxu3 %v1454_v55 }
 0xbb1   :  { %v345_v59 = vpop.permute.xlu1 %344  ;;  %802 = vmatpush.msrb.mxu3 %v1464_v57 }
 0xbb2   :  { %348 = vst.msk [vmem:[#allocation2] sm:$0xc0] %vm347_vm9, %v345_v59  ;;  %642 = vmatmul.f32.vlgmr.msra.gmra.mxu3 %v1288_v6  ;;  %v1492_v6 = vld [vmem:[%s1657_s6] ss:$0 sm:$0xff] }
 0xbb3   :  { %1019 = vmatpush.msra.mxu3 %v1449_v52 }
 0xbb5   :  { %1020 = vmatpush.msra.mxu3 %v1452_v53 }
 0xbb7   :  { %1021 = vmatpush.msra.mxu3 %v1454_v55 }
 0xbb9   :  { %v583_v60 = vld [vmem:[#allocation2] sm:$0xff]  ;;  %1022 = vmatpush.msra.mxu3 %v1464_v57 }
 0xbba   :  { %1121 = vmatmul.msk.f32.vlgmr.msra.gmra.mxu2 %vm115_vm6, %v583_v60 }
 0xc2d   :  { %v425_v61 = vpop.f32.mrf.mxu3 }
 0xc2e   :  { %v429_v62 = vrot.slane %v425_v61, 6 }
 0xc30   :  { %v431_v63 = vadd.f32 %v429_v62, %v1429_v31 }
 0xc32   :  { %v432_v0 = vmul.f32 0.5, %v431_v63 }
 0xc34   :  { %v433_v1 = vsel %vm1377_vm4, %v431_v63, %v432_v0 }
 0xc35   :  { %1162 = vtanh.f32 %v433_v1  ;;  %v643_v5 = vpop.f32.mrf.mxu3 }
 0xc3b   :  { %v1163_v2 = vpop.eup %1162 }
 0xc3c   :  { %v435_v3 = vmul.f32 0.5, %v1163_v2 }
 0xc3d   :  { %v620_v4 = vpop.f32.mrf.mxu2 }
 0xc3e   :  { %v1495_v7 = vadd.f32 %v1492_v6, %v620_v4  ;;  %v436_v9 = vadd.f32 0.5, %v435_v3 }
 0xc40   :  { %v646_v10 = vadd.f32 %v643_v5, %v1495_v7  ;;  %v437_v12 = vsel %vm1377_vm4, %v1163_v2, %v436_v9 }
 0xc41   :  { %443 = vrot.lane.b32.xlu2 %v437_v12, %s1289_s3  ;;  %v441_v24 = vmul.f32 %v439_v23, %v437_v12 }
 0xc42   :  { %v647_v13 = vmul.f32 0.5, %v646_v10 }
 0xc44   :  { %v648_v15 = vsel %vm1377_vm4, %v646_v10, %v647_v13 }
 0xc45   :  { %1164 = vtanh.f32 %v648_v15 }
 0xc4b   :  { %v1165_v16 = vpop.eup %1164 }
 0xc4c   :  { %v650_v17 = vmul.f32 0.5, %v1165_v16 }
 0xc4e   :  { %v651_v18 = vadd.f32 0.5, %v650_v17 }
 0xc50   :  { %v652_v19 = vsel %vm1377_vm4, %v1165_v16, %v651_v18 }
 0xc51   :  { %655 = vrot.lane.b32.xlu0 %v652_v19, %s1289_s3  ;;  %v653_v28 = vmul.f32 0.0, %v652_v19 }
 0xc9b   :  { %v444_v20 = vpop.permute.xlu2 %443 }
 0xc9c   :  { %v446_v21 = vmul.f32 %v444_v20, %v437_v12 }
 0xc9e   :  { %448 = vrot.lane.b32.xlu1 %v446_v21, %s1290_s10 }
 0xcc3   :  { %v656_v22 = vpop.permute.xlu0 %655 }
 0xcc4   :  { %v658_v11 = vmul.f32 %v656_v22, %v652_v19 }
 0xcc6   :  { %660 = vrot.lane.b32.xlu2 %v658_v11, %s1290_s10 }
 0xd10   :  { %v449_v25 = vpop.permute.xlu1 %448 }
 0xd11   :  { %v451_v26 = vadd.f32 %v449_v25, %v441_v24 }
 0xd13   :  { %1166 = vtanh.f32 %v451_v26  ;;  %v499_v1 = vrot.slane %v451_v26, 6 }
 0xd19   :  { %v1167_v27 = vpop.eup %1166 }
 0xd1a   :  { %454 = vrot.lane.b32.xlu0 %v1167_v27, %s1289_s3 }
 0xd20   :  { %v661_v29 = vpop.permute.xlu2 %660 }
 0xd21   :  { %v663_v30 = vadd.f32 %v661_v29, %v653_v28 }
 0xd23   :  { %1168 = vtanh.f32 %v663_v30  ;;  %v706_v9 = vrot.slane %v663_v30, 6 }
 0xd29   :  { %v1169_v32 = vpop.eup %1168 }
 0xd2a   :  { %666 = vrot.lane.b32.xlu1 %v1169_v32, %s1289_s3 }
 0xd8c   :  { %v455_v33 = vpop.permute.xlu0 %454 }
 0xd8d   :  { %v1511_v34 = vmul.f32 %v455_v33, %v437_v12 }
 0xd8f   :  { %v463_v35 = vrot.slane %v1511_v34, 2 }
 0xd91   :  { %464 = vrot.lane.b32.xlu2 %v463_v35, %s1290_s10 }
 0xd9c   :  { %v667_v36 = vpop.permute.xlu1 %666 }
 0xd9d   :  { %v669_v37 = vmul.f32 %v667_v36, %v652_v19 }
 0xd9f   :  { %671 = vrot.lane.b32.xlu0 %v669_v37, %s1290_s10 }
 0xdeb   :  { %v465_v38 = vpop.permute.xlu2 %464 }
 0xdec   :  { %1119 = vmatmul.msk.f32.vlgmr.msrb.gmra.mxu0 %vm115_vm6, %v465_v38 }
 0xded   :  { %855 = vmatpush.msrb.mxu0 %v1449_v52 }
 0xdef   :  { %856 = vmatpush.msrb.mxu0 %v1452_v53 }
 0xdf1   :  { %857 = vmatpush.msrb.mxu0 %v1454_v55 }
 0xdf3   :  { %858 = vmatpush.msrb.mxu0 %v1464_v57 }
 0xe11   :  { %v672_v39 = vpop.permute.xlu0 %671 }
 0xe12   :  { %1123 = vmatmul.msk.f32.vlgmr.msra.gmra.mxu0 %vm115_vm6, %v672_v39 }
 0xe69   :  { %v485_v40 = vpop.f32.mrf.mxu0 }
 0xe6a   :  { %v489_v41 = vrot.slane %v485_v40, 4 }
 0xe6c   :  { %v491_v8 = vadd.f32 %v489_v41, %v1429_v31 }
 0xe6e   :  { %v492_v42 = vmul.f32 0.5, %v491_v8 }
 0xe70   :  { %v493_v43 = vsel %vm1377_vm4, %v491_v8, %v492_v42 }
 0xe71   :  { %1170 = vtanh.f32 %v493_v43 }
 0xe77   :  { %v1171_v44 = vpop.eup %1170 }
 0xe78   :  { %v495_v45 = vmul.f32 0.5, %v1171_v44 }
 0xe7a   :  { %v496_v46 = vadd.f32 0.5, %v495_v45 }
 0xe7c   :  { %v497_v48 = vsel %vm1377_vm4, %v1171_v44, %v496_v46 }
 0xe7d   :  { %503 = vrot.lane.b32.xlu1 %v497_v48, %s1289_s3  ;;  %v501_v2 = vmul.f32 %v499_v1, %v497_v48 }
 0xe8f   :  { %v692_v49 = vpop.f32.mrf.mxu0 }
 0xe90   :  { %v696_v47 = vrot.slane %v692_v49, 6 }
 0xe92   :  { %v698_v50 = vadd.f32 %v696_v47, %v1495_v7 }
 0xe94   :  { %v699_v51 = vmul.f32 0.5, %v698_v50 }
 0xe96   :  { %v700_v54 = vsel %vm1377_vm4, %v698_v50, %v699_v51 }
 0xe97   :  { %1172 = vtanh.f32 %v700_v54 }
 0xe9d   :  { %v1173_v56 = vpop.eup %1172 }
 0xe9e   :  { %v702_v58 = vmul.f32 0.5, %v1173_v56 }
 0xea0   :  { %v703_v59 = vadd.f32 0.5, %v702_v58 }
 0xea2   :  { %v704_v60 = vsel %vm1377_vm4, %v1173_v56, %v703_v59 }
 0xea3   :  { %710 = vrot.lane.b32.xlu2 %v704_v60, %s1289_s3  ;;  %v708_v10 = vmul.f32 %v706_v9, %v704_v60 }
 0xeef   :  { %v504_v61 = vpop.permute.xlu1 %503 }
 0xef0   :  { %v506_v62 = vmul.f32 %v504_v61, %v497_v48 }
 0xef2   :  { %508 = vrot.lane.b32.xlu0 %v506_v62, %s1290_s10 }
 0xefd   :  { %v711_v63 = vpop.permute.xlu2 %710 }
 0xefe   :  { %v713_v0 = vmul.f32 %v711_v63, %v704_v60 }
 0xf00   :  { %715 = vrot.lane.b32.xlu1 %v713_v0, %s1290_s10 }
 0xf64   :  { %v509_v3 = vpop.permute.xlu0 %508 }
 0xf65   :  { %v1536_v4 = vadd.f32 %v509_v3, %v501_v2 }
 0xf67   :  { %1174 = vtanh.f32 %v1536_v4  ;;  %v559_v59 = vrot.slane %v1536_v4, 6 }
 0xf6d   :  { %v1175_v5 = vpop.eup %1174 }
 0xf6e   :  { %514 = vrot.lane.b32.xlu2 %v1175_v5, %s1289_s3 }
 0xf72   :  { %v716_v12 = vpop.permute.xlu1 %715 }
 0xf73   :  { %v718_v13 = vadd.f32 %v716_v12, %v708_v10 }
 0xf75   :  { %1176 = vtanh.f32 %v718_v13  ;;  %v762_v41 = vrot.slane %v718_v13, 6 }
 0xf7b   :  { %v1177_v15 = vpop.eup %1176 }
 0xf7c   :  { %721 = vrot.lane.b32.xlu0 %v1177_v15, %s1289_s3 }
 0xfc8   :  { %v515_v16 = vpop.permute.xlu2 %514 }
 0xfc9   :  { %v1541_v17 = vmul.f32 %v515_v16, %v497_v48 }
 0xfcb   :  { %v523_v18 = vrot.slane %v1541_v17, 4 }
 0xfcd   :  { %524 = vrot.lane.b32.xlu1 %v523_v18, %s1290_s10 }
 0xfee   :  { %v722_v19 = vpop.permute.xlu0 %721 }
 0xfef   :  { %v724_v20 = vmul.f32 %v722_v19, %v704_v60 }
 0xff1   :  { %v726_v21 = vrot.slane %v724_v20, 2 }
 0xff3   :  { %727 = vrot.lane.b32.xlu2 %v726_v21, %s1290_s10 }
0x103f   :  { %v525_v22 = vpop.permute.xlu1 %524 }
0x1040   :  { %1120 = vmatmul.msk.f32.vlgmr.msra.gmra.mxu1 %vm115_vm6, %v525_v22 }
0x1041   :  { %907 = vmatpush.msra.mxu1 %v1449_v52 }
0x1043   :  { %908 = vmatpush.msra.mxu1 %v1452_v53 }
0x1045   :  { %909 = vmatpush.msra.mxu1 %v1454_v55 }
0x1047   :  { %910 = vmatpush.msra.mxu1 %v1464_v57 }
0x104d   :  { %v728_v11 = vpop.permute.xlu2 %727 }
0x104e   :  { %1124 = vmatmul.msk.f32.vlgmr.msrb.gmra.mxu1 %vm115_vm6, %v728_v11 }
0x10bd   :  { %v545_v23 = vpop.f32.mrf.mxu1 }
0x10be   :  { %v549_v57 = vrot.slane %v545_v23, 2 }
0x10c0   :  { %v551_v30 = vadd.f32 %v549_v57, %v1429_v31 }
0x10c2   :  { %v552_v32 = vmul.f32 0.5, %v551_v30 }
0x10c4   :  { %v553_v33 = vsel %vm1377_vm4, %v551_v30, %v552_v32 }
0x10cb   :  { %v748_v24 = vpop.f32.mrf.mxu1 }
0x10cc   :  { %v752_v25 = vrot.slane %v748_v24, 4 }
0x10ce   :  { %v754_v26 = vadd.f32 %v752_v25, %v1495_v7 }
0x10d0   :  { %v755_v27 = vmul.f32 0.5, %v754_v26 }
0x10d2   :  { %v756_v28 = vsel %vm1377_vm4, %v754_v26, %v755_v27 }
0x10d3   :  { %1178 = vtanh.f32 %v756_v28 }
0x10d4   :  { %1180 = vtanh.f32 %v553_v33 }
0x10d9   :  { %v1179_v52 = vpop.eup %1178 }
0x10da   :  { %v758_v29 = vmul.f32 0.5, %v1179_v52  ;;  %v1181_v35 = vpop.eup %1180 }
0x10db   :  { %v555_v38 = vmul.f32 0.5, %v1181_v35 }
0x10dc   :  { %v759_v53 = vadd.f32 0.5, %v758_v29 }
0x10dd   :  { %v556_v39 = vadd.f32 0.5, %v555_v38 }
0x10de   :  { %v760_v55 = vsel %vm1377_vm4, %v1179_v52, %v759_v53 }
0x10df   :  { %766 = vrot.lane.b32.xlu0 %v760_v55, %s1289_s3  ;;  %v557_v40 = vsel %vm1377_vm4, %v1181_v35, %v556_v39  ;;  %v764_v8 = vmul.f32 %v762_v41, %v760_v55 }
0x10e0   :  { %v561_v62 = vmul.f32 %v559_v59, %v557_v40 }
0x1151   :  { %v767_v36 = vpop.permute.xlu0 %766 }
0x1152   :  { %v769_v37 = vmul.f32 %v767_v36, %v760_v55 }
0x1154   :  { %771 = vrot.lane.b32.xlu1 %v769_v37, %s1290_s10 }
0x115c   :  { %563 = vrot.lane.b32.xlu1 %v557_v40, %s1289_s3 }
0x11c6   :  { %v772_v31 = vpop.permute.xlu1 %771 }
0x11c7   :  { %v774_v42 = vadd.f32 %v772_v31, %v764_v8 }
0x11c9   :  { %1182 = vtanh.f32 %v774_v42  ;;  %v818_v10 = vrot.slane %v774_v42, 6 }
0x11ce   :  { %v564_v48 = vpop.permute.xlu1 %563 }
0x11cf   :  { %v1183_v43 = vpop.eup %1182  ;;  %v566_v49 = vmul.f32 %v564_v48, %v557_v40 }
0x11d0   :  { %777 = vrot.lane.b32.xlu2 %v1183_v43, %s1289_s3 }
0x122a   :  { %v778_v44 = vpop.permute.xlu2 %777 }
0x122b   :  { %v780_v45 = vmul.f32 %v778_v44, %v760_v55 }
0x122d   :  { %v782_v46 = vrot.slane %v780_v45, 4 }
0x122f   :  { %783 = vrot.lane.b32.xlu0 %v782_v46, %s1290_s10 }
0x1237   :  { %568 = vrot.lane.b32.xlu0 %v566_v49, %s1290_s10 }
0x12a1   :  { %v784_v47 = vpop.permute.xlu0 %783 }
0x12a2   :  { %1125 = vmatmul.msk.f32.vlgmr.msrb.gmra.mxu3 %vm115_vm6, %v784_v47 }
0x12a9   :  { %v569_v61 = vpop.permute.xlu0 %568 }
0x12aa   :  { %v571_v0 = vadd.f32 %v569_v61, %v561_v62 }
0x1325   :  { %v804_v50 = vpop.f32.mrf.mxu3 }
0x1326   :  { %v808_v51 = vrot.slane %v804_v50, 2 }
0x1328   :  { %v810_v54 = vadd.f32 %v808_v51, %v1495_v7 }
0x132a   :  { %v811_v56 = vmul.f32 0.5, %v810_v54 }
0x132c   :  { %v812_v58 = vsel %vm1377_vm4, %v810_v54, %v811_v56 }
0x132d   :  { %1184 = vtanh.f32 %v812_v58 }
0x132e   :  { %1186 = vtanh.f32 %v571_v0 }
0x1333   :  { %v1185_v60 = vpop.eup %1184 }
0x1334   :  { %v814_v63 = vmul.f32 0.5, %v1185_v60  ;;  %v1187_v7 = vpop.eup %1186 }
0x1336   :  { %v815_v1 = vadd.f32 0.5, %v814_v63 }
0x1338   :  { %v816_v2 = vsel %vm1377_vm4, %v1185_v60, %v815_v1 }
0x1339   :  { %822 = vrot.lane.b32.xlu2 %v816_v2, %s1289_s3  ;;  %v820_v12 = vmul.f32 %v818_v10, %v816_v2 }
0x1341   :  { %574 = vrot.lane.b32.xlu2 %v1187_v7, %s1289_s3 }
0x1349   :  { %519 = vrot.lane.b32.xlu2 %v1541_v17, %s1290_s10 }
0x1393   :  { %v823_v3 = vpop.permute.xlu2 %822 }
0x1394   :  { %v825_v4 = vmul.f32 %v823_v3, %v816_v2 }
0x1396   :  { %827 = vrot.lane.b32.xlu1 %v825_v4, %s1290_s10 }
0x139b   :  { %v575_v5 = vpop.permute.xlu2 %574 }
0x139c   :  { %v577_v17 = vmul.f32 %v575_v5, %v557_v40 }
0x139e   :  { %459 = vrot.lane.b32.xlu1 %v1511_v34, %s1290_s10 }
0x13a3   :  { %v520_v9 = vpop.permute.xlu2 %519 }
0x13a4   :  { %522 = vst.msk [vmem:[#allocation2 + $0x8] sm:$0x30] %vm286_vm8, %v520_v9 }
0x1408   :  { %v828_v13 = vpop.permute.xlu1 %827 }
0x1409   :  { %v830_v15 = vadd.f32 %v828_v13, %v820_v12 }
0x140b   :  { %1188 = vtanh.f32 %v830_v15 }
0x1410   :  { %v460_v16 = vpop.permute.xlu1 %459 }
0x1411   :  { %v1189_v18 = vpop.eup %1188  ;;  %462 = vst.msk [vmem:[#allocation2 + $0x8] sm:$0xc] %vm225_vm7, %v460_v16 }
0x1412   :  { %833 = vrot.lane.b32.xlu0 %v1189_v18, %s1289_s3 }
0x141a   :  { %579 = vrot.lane.b32.xlu0 %v577_v17, %s1290_s10 }
0x1484   :  { %v834_v19 = vpop.permute.xlu0 %833 }
0x1485   :  { %v836_v20 = vmul.f32 %v834_v19, %v816_v2 }
0x1487   :  { %v838_v34 = vrot.slane %v836_v20, 6 }
0x1489   :  { %839 = vrot.lane.b32.xlu1 %v838_v34, %s1290_s10 }
0x148c   :  { %v580_v21 = vpop.permute.xlu0 %579 }
0x148d   :  { %582 = vst.msk [vmem:[#allocation2 + $0x8] sm:$0xc0] %vm347_vm9, %v580_v21 }
0x1494   :  { %v584_v22 = vld [vmem:[#allocation2 + $0x8] sm:$0xff] }
0x1495   :  { %1122 = vmatmul.msk.f32.gmra.mxu2 %vm115_vm6, %v584_v22 }
0x14fb   :  { %v840_v11 = vpop.permute.xlu1 %839 }
0x14fc   :  { %1126 = vmatmul.msk.f32.vlgmr.msrb.gmra.mxu0 %vm115_vm6, %v840_v11 }
0x1518   :  { %v623_v23 = vpop.f32.mrf.mxu2 }
0x1519   :  { %v1591_v24 = vadd.f32 %v1492_v6, %v623_v23  ;;  %v871_v6 = vrot.slane %v830_v15, 6 }
0x1579   :  { %v860_v25 = vpop.f32.mrf.mxu0 }
0x157a   :  { %v863_v26 = vadd.f32 %v860_v25, %v1591_v24 }
0x157c   :  { %v864_v27 = vmul.f32 0.5, %v863_v26 }
0x157e   :  { %v865_v28 = vsel %vm1377_vm4, %v863_v26, %v864_v27 }
0x157f   :  { %1190 = vtanh.f32 %v865_v28 }
0x1585   :  { %v1191_v52 = vpop.eup %1190 }
0x1586   :  { %v867_v29 = vmul.f32 0.5, %v1191_v52 }
0x1588   :  { %v868_v53 = vadd.f32 0.5, %v867_v29 }
0x158a   :  { %v869_v55 = vsel %vm1377_vm4, %v1191_v52, %v868_v53 }
0x158b   :  { %875 = vrot.lane.b32.xlu2 %v869_v55, %s1289_s3  ;;  %v873_v32 = vmul.f32 %v871_v6, %v869_v55 }
0x15e5   :  { %v876_v57 = vpop.permute.xlu2 %875 }
0x15e6   :  { %v878_v30 = vmul.f32 %v876_v57, %v869_v55 }
0x15e8   :  { %880 = vrot.lane.b32.xlu0 %v878_v30, %s1290_s10 }
0x165a   :  { %v881_v33 = vpop.permute.xlu0 %880 }
0x165b   :  { %v883_v35 = vadd.f32 %v881_v33, %v873_v32  ;;  %v1060_v32 = vld [vmem:[%s1658_s7 + $0x18] sm:$0xff]  ;;  %v1058_v33 = vld [vmem:[%s1658_s7 + $0x8] sm:$0xff] }
0x165c   :  { %1083 = vmatpush.msra.mxu0 %v1060_v32 }
0x165d   :  { %1192 = vtanh.f32 %v883_v35  ;;  %v926_v47 = vrot.slane %v883_v35, 6  ;;  %v1057_v35 = vld [vmem:[%s1658_s7] sm:$0xff]  ;;  %s1100_s7 = sshll.u32 %s1660_s9, 4  ;;  %s1101_s7 = int_to_ptr.hbm [resolvable:$true] %s1100_s7 }
0x165e   :  { %1084 = vmatpush.msra.mxu0 %v1059_v14 }
0x1660   :  { %1085 = vmatpush.msra.mxu0 %v1058_v33 }
0x1662   :  { %1086 = vmatpush.msra.mxu0 %v1057_v35 }
0x1663   :  { %v1193_v36 = vpop.eup %1192 }
0x1664   :  { %886 = vrot.lane.b32.xlu1 %v1193_v36, %s1289_s3 }
0x16d6   :  { %v887_v37 = vpop.permute.xlu1 %886 }
0x16d7   :  { %v889_v38 = vmul.f32 %v887_v37, %v869_v55 }
0x16d9   :  { %891 = vrot.lane.b32.xlu2 %v889_v38, %s1290_s10 }
0x1733   :  { %v892_v39 = vpop.permute.xlu2 %891 }
0x1734   :  { %1127 = vmatmul.msk.f32.vlgmr.msra.gmra.mxu1 %vm115_vm6, %v892_v39 }
0x17b1   :  { %v912_v40 = vpop.f32.mrf.mxu1 }
0x17b2   :  { %v916_v41 = vrot.slane %v912_v40, 6  ;;  %v1141_v40 = vld [vmem:[%s1659_s8] ss:$0 sm:$0xff] }
0x17b4   :  { %v918_v8 = vadd.f32 %v916_v41, %v1591_v24 }
0x17b6   :  { %v919_v31 = vmul.f32 0.5, %v918_v8 }
0x17b8   :  { %v920_v42 = vsel %vm1377_vm4, %v918_v8, %v919_v31 }
0x17b9   :  { %1194 = vtanh.f32 %v920_v42 }
0x17bf   :  { %v1195_v43 = vpop.eup %1194 }
0x17c0   :  { %v922_v44 = vmul.f32 0.5, %v1195_v43 }
0x17c2   :  { %v923_v45 = vadd.f32 0.5, %v922_v44 }
0x17c4   :  { %v924_v46 = vsel %vm1377_vm4, %v1195_v43, %v923_v45 }
0x17c5   :  { %930 = vrot.lane.b32.xlu0 %v924_v46, %s1289_s3  ;;  %v928_v50 = vmul.f32 %v926_v47, %v924_v46 }
0x1837   :  { %v931_v48 = vpop.permute.xlu0 %930 }
0x1838   :  { %v933_v49 = vmul.f32 %v931_v48, %v924_v46 }
0x183a   :  { %935 = vrot.lane.b32.xlu1 %v933_v49, %s1290_s10 }
0x18ac   :  { %v936_v51 = vpop.permute.xlu1 %935 }
0x18ad   :  { %v938_v54 = vadd.f32 %v936_v51, %v928_v50 }
0x18af   :  { %1196 = vtanh.f32 %v938_v54  ;;  %v982_v12 = vrot.slane %v938_v54, 6 }
0x18b5   :  { %v1197_v56 = vpop.eup %1196 }
0x18b6   :  { %941 = vrot.lane.b32.xlu2 %v1197_v56, %s1289_s3 }
0x1910   :  { %v942_v58 = vpop.permute.xlu2 %941 }
0x1911   :  { %v944_v59 = vmul.f32 %v942_v58, %v924_v46 }
0x1913   :  { %v946_v60 = vrot.slane %v944_v59, 2 }
0x1915   :  { %947 = vrot.lane.b32.xlu0 %v946_v60, %s1290_s10 }
0x1987   :  { %v948_v61 = vpop.permute.xlu0 %947 }
0x1988   :  { %1128 = vmatmul.msk.f32.vlgmr.msrb.gmra.mxu2 %vm115_vm6, %v948_v61 }
0x1a0b   :  { %v968_v62 = vpop.f32.mrf.mxu2 }
0x1a0c   :  { %v972_v63 = vrot.slane %v968_v62, 4 }
0x1a0e   :  { %v974_v0 = vadd.f32 %v972_v63, %v1591_v24 }
0x1a10   :  { %v975_v1 = vmul.f32 0.5, %v974_v0 }
0x1a12   :  { %v976_v2 = vsel %vm1377_vm4, %v974_v0, %v975_v1 }
0x1a13   :  { %1198 = vtanh.f32 %v976_v2 }
0x1a19   :  { %v1199_v7 = vpop.eup %1198 }
0x1a1a   :  { %v978_v3 = vmul.f32 0.5, %v1199_v7 }
0x1a1c   :  { %v979_v4 = vadd.f32 0.5, %v978_v3 }
0x1a1e   :  { %v980_v5 = vsel %vm1377_vm4, %v1199_v7, %v979_v4 }
0x1a1f   :  { %986 = vrot.lane.b32.xlu1 %v980_v5, %s1289_s3  ;;  %v984_v13 = vmul.f32 %v982_v12, %v980_v5 }
0x1a91   :  { %v987_v9 = vpop.permute.xlu1 %986 }
0x1a92   :  { %v989_v10 = vmul.f32 %v987_v9, %v980_v5 }
0x1a94   :  { %991 = vrot.lane.b32.xlu2 %v989_v10, %s1290_s10 }
0x1aee   :  { %v992_v15 = vpop.permute.xlu2 %991 }
0x1aef   :  { %v994_v16 = vadd.f32 %v992_v15, %v984_v13 }
0x1af1   :  { %1200 = vtanh.f32 %v994_v16  ;;  %v1038_v55 = vrot.slane %v994_v16, 6 }
0x1af7   :  { %v1201_v18 = vpop.eup %1200 }
0x1af8   :  { %997 = vrot.lane.b32.xlu0 %v1201_v18, %s1289_s3 }
0x1b6a   :  { %v998_v17 = vpop.permute.xlu0 %997 }
0x1b6b   :  { %v1000_v19 = vmul.f32 %v998_v17, %v980_v5 }
0x1b6d   :  { %v1002_v20 = vrot.slane %v1000_v19, 4 }
0x1b6f   :  { %1003 = vrot.lane.b32.xlu1 %v1002_v20, %s1290_s10 }
0x1be1   :  { %v1004_v34 = vpop.permute.xlu1 %1003 }
0x1be2   :  { %1129 = vmatmul.msk.f32.vlgmr.msra.gmra.mxu3 %vm115_vm6, %v1004_v34 }
0x1c65   :  { %v1024_v21 = vpop.f32.mrf.mxu3 }
0x1c66   :  { %v1028_v22 = vrot.slane %v1024_v21, 2 }
0x1c68   :  { %v1030_v11 = vadd.f32 %v1028_v22, %v1591_v24 }
0x1c6a   :  { %v1031_v23 = vmul.f32 0.5, %v1030_v11 }
0x1c6c   :  { %v1032_v25 = vsel %vm1377_vm4, %v1030_v11, %v1031_v23 }
0x1c6d   :  { %1202 = vtanh.f32 %v1032_v25 }
0x1c73   :  { %v1203_v26 = vpop.eup %1202 }
0x1c74   :  { %v1034_v27 = vmul.f32 0.5, %v1203_v26 }
0x1c76   :  { %v1035_v28 = vadd.f32 0.5, %v1034_v27 }
0x1c78   :  { %v1036_v52 = vsel %vm1377_vm4, %v1203_v26, %v1035_v28 }
0x1c79   :  { %1042 = vrot.lane.b32.xlu2 %v1036_v52, %s1289_s3  ;;  %v1040_v57 = vmul.f32 %v1038_v55, %v1036_v52 }
0x1cd3   :  { %v1043_v29 = vpop.permute.xlu2 %1042 }
0x1cd4   :  { %v1045_v53 = vmul.f32 %v1043_v29, %v1036_v52 }
0x1cd6   :  { %1047 = vrot.lane.b32.xlu0 %v1045_v53, %s1290_s10 }
0x1d48   :  { %v1048_v24 = vpop.permute.xlu0 %1047 }
0x1d49   :  { %v1050_v30 = vadd.f32 %v1048_v24, %v1040_v57 }
0x1d4b   :  { %1204 = vtanh.f32 %v1050_v30 }
0x1d51   :  { %v1205_v6 = vpop.eup %1204 }
0x1d52   :  { %1053 = vrot.lane.b32.xlu1 %v1205_v6, %s1289_s3 }
0x1dc4   :  { %v1054_v36 = vpop.permute.xlu1 %1053 }
0x1dc5   :  { %v1056_v37 = vmul.f32 %v1054_v36, %v1036_v52 }
0x1dc7   :  { %v1066_v38 = vrot.slane %v1056_v37, 6 }
0x1dc9   :  { %1067 = vrot.lane.b32.xlu2 %v1066_v38, %s1290_s10 }
0x1e23   :  { %v1068_v39 = vpop.permute.xlu2 %1067 }
0x1e24   :  { %1130 = vmatmul.msk.f32.vlgmr.msra.gmra.mxu0 %vm115_vm6, %v1068_v39 }
0x1ea1   :  { %v1088_v41 = vpop.f32.mrf.mxu0 }
0x1ea2   :  { %v1089_v8 = vadd.f32 %v1141_v40, %v1088_v41 }
0x1ea4   :  { %1092 = vst.msk [vmem:[#allocation8] sm:$0x3] %vm1091_vm10, %v1089_v8 }
0x1ea5   :  { %1103 = dma.vmem_to_hbm [thread:$0]  %s1099_s5, 32, %s1101_s7, [#allocation5]  }
0x1ea6   :  { %1282 = dma.done.wait [#allocation5], 32  }
0x1ea7   :  { %1283 = vsyncadd [#allocation5], 4294967264 }
0x1ea8   :  { %1108 = vsyncpa [#allocation4], 1 }
0x1ea9   :  { %1109 = vsyncpa [#allocation7], 1 }
0x1eaa   :  { %1110 = vsyncpa [#allocation5], 1 }

</bundles_post_ra>
